<compile_context>
chip_gen: v5e
topology: v5e:2x2
jax: 0.10.0
libtpu: 0.0.40
codegen_flags: <defaults>
</compile_context>

<pallas_src>
import jax
import jax.numpy as jnp
from jax.experimental import pallas as pl
from jax.experimental.pallas import tpu as pltpu

EPS_BN = 1e-5
NEG_SLOPE = 0.01  # F.leaky_relu default


def _round_up(x, m):
    return (x + m - 1) // m * m


def _leaky(v):
    return jnp.where(v > 0, v, NEG_SLOPE * v)


def _bn_normalize(v):
    # training-mode BatchNorm1d normalization (affine folded into next layer).
    # single pass: mean and E[x^2] together; biased variance matches PyTorch.
    mean = jnp.mean(v, axis=0, keepdims=True)
    ex2 = jnp.mean(v * v, axis=0, keepdims=True)
    var = ex2 - mean * mean
    return (v - mean) * jax.lax.rsqrt(var + EPS_BN)


def _dot(a, b):
    return jnp.dot(a, b, preferred_element_type=jnp.float32)


def _vec_layout(n_features, z_dim):
    """128-lane-aligned segment offsets for the packed per-channel vector."""
    widths = (
        ("b2", 128),              # conv2 bias (+ BN1 beta folded)
        ("bml", 2 * z_dim),       # fused fc_mu|fc_var bias (+ BN3 beta folded)
        ("bde1", 256),            # de1 bias
        ("bd2", 256),             # de2 bias tiled over 2 output positions
        ("bd3", 256),             # de3 bias tiled over 4 output positions
        ("bd5", 2 * n_features),  # de5 bias tiled over 2 output positions
    )
    layout, off = {}, 0
    for name, w in widths:
        layout[name] = (off, w)
        off += _round_up(w, 128)
    return layout, off


def _w256_layout(n_features, z_dim):
    """128-lane-aligned offsets for the packed K=256 weight slab."""
    widths = (("wd2", 256), ("wd3", 256),
              ("wml", 2 * z_dim), ("wd5", 2 * n_features))
    layout, off = {}, 0
    for name, w in widths:
        layout[name] = (off, w)
        off += _round_up(w, 128)
    return layout, off


def make_kernel(n_features, z_dim, in_width, out_width):
    lay256, _ = _w256_layout(n_features, z_dim)
    vlay, _ = _vec_layout(n_features, z_dim)
    nf, zd = n_features, z_dim

    def kernel(xe_ref, w13_ref, w2_ref, w256_ref, wde1_ref, vec_ref, out_ref):
        def bias(name):
            off, w = vlay[name]
            return vec_ref[:, off:off + w]            # (1, w), broadcasts over batch

        def wslab(name):
            off, w = lay256[name]
            return w256_ref[:, off:off + w]           # static lane slice (view)

        xe = xe_ref[...]                              # (B, in_width): [x | eps | 1 | 0]
        eps = xe[:, nf:nf + zd]                       # (B, z)

        # ---- encoder: Conv1d on L==1 -> center-tap matmuls -------------------
        # conv1 bias folded into w1 via the constant-1 input lane; BN affine
        # folded into the next weight matrix; BN here = batch-stat normalize.
        h1 = _bn_normalize(_leaky(_dot(xe, w13_ref[:in_width, 0:64])))       # (B, 64)
        h2 = _bn_normalize(_leaky(_dot(h1, w2_ref[...]) + bias("b2")))       # (B, 128)
        # en3 + BN3 split into two independent 128-lane column halves
        # (BN stats are per-channel -> exact; halves the live vreg set).
        h3a = _bn_normalize(_dot(h2, w13_ref[:128, 128:256]))                # (B, 128)
        h3b = _bn_normalize(_dot(h2, w13_ref[:128, 256:384]))                # (B, 128)

        # fused fc_mu | fc_var, K split to match the h3 halves
        mloff, mlw = lay256["wml"]
        ml = (_dot(h3a, w256_ref[0:128, mloff:mloff + mlw])
              + _dot(h3b, w256_ref[128:256, mloff:mloff + mlw])
              + bias("bml"))                                                 # (B, 2z)
        mu = ml[:, :zd]
        logvar = ml[:, zd:]

        # ---- reparameterize ---------------------------------------------------
        z = eps * jnp.exp(0.5 * logvar) + mu                                 # (B, z)

        # ---- decoder: block-matrix form of the unrolled (transposed) convs ----
        h4 = _leaky(_dot(z, wde1_ref[...]) + bias("bde1"))                   # (B, 256)
        s01 = _dot(h4, wslab("wd2")) + bias("bd2")                           # (B, 256)
        t = _dot(s01, wslab("wd3")) + bias("bd3")                            # (B, 256)
        o = jnp.tanh(_dot(t, wslab("wd5")) + bias("bd5"))                    # (B, 2nf)
        dec = 0.5 * (o[:, :nf] + o[:, nf:])                                  # (B, nf)

        # ---- packed lane-dense output slab: [dec | mu | logvar | 0-pad] --------
        out_ref[...] = jnp.zeros(out_ref.shape, jnp.float32)
        out_ref[:, 0:nf] = dec
        out_ref[:, nf:nf + 2 * zd] = ml

    return kernel


def cnn_vae_forward(x, eps, params):
    """x: (B, nf) or (G, B, nf) stack of G independent batches.

    Each grid step is one full CNN_VAE.forward on one batch (its own
    training-mode BatchNorm statistics), so single-batch semantics match the
    PyTorch module exactly; stacking batches amortizes weight DMAs and feeds
    both TensorCores on v7x.
    """
    squeeze = x.ndim == 2
    if squeeze:
        x, eps = x[None], eps[None]
    G, B, n_features = x.shape
    z_dim = eps.shape[-1]
    in_width = _round_up(n_features + z_dim + 1, 128)
    out_width = _round_up(n_features + 2 * z_dim, 128)

    weights = tuple(params)                       # (w13, w2, w256, wde1, vec)

    # lane-dense packed input slab per batch row: [x | eps | 1 | 0-pad]
    pad = in_width - (n_features + z_dim + 1)
    xe = jnp.concatenate(
        [x.astype(jnp.float32), eps.astype(jnp.float32),
         jnp.ones((G, B, 1), jnp.float32),
         jnp.zeros((G, B, pad), jnp.float32)], axis=-1)

    kn = (in_width * 64 + 64 * 128 + 128 * 256 + 256 * 2 * z_dim
          + z_dim * 256 + 256 * 256 + 256 * 256 + 256 * 2 * n_features)
    cost = pl.CostEstimate(
        flops=int(2 * G * B * kn),
        transcendentals=int(G * (B * (z_dim + 2 * n_features) + 64 + 128 + 256)),
        bytes_accessed=int(4 * (xe.size + sum(int(w.size) for w in weights)
                                + G * B * out_width)),
    )

    def const_spec(a):  # weight stays VMEM-resident: constant block index
        return pl.BlockSpec(a.shape, lambda g, _nd=a.ndim: (0,) * _nd)

    packed = pl.pallas_call(
        make_kernel(n_features, z_dim, in_width, out_width),
        out_shape=jax.ShapeDtypeStruct((G, B, out_width), jnp.float32),
        grid=(G,),
        in_specs=[pl.BlockSpec((None, B, in_width), lambda g: (g, 0, 0))]
                 + [const_spec(w) for w in weights],
        out_specs=pl.BlockSpec((None, B, out_width), lambda g: (g, 0, 0)),
        compiler_params=pltpu.CompilerParams(
            dimension_semantics=("parallel",)),
        cost_estimate=cost,
    )(xe, *weights)

    dec = packed[..., :n_features]
    mu = packed[..., n_features:n_features + z_dim]
    log_var = packed[..., n_features + z_dim:n_features + 2 * z_dim]
    if squeeze:
        dec, mu, log_var = dec[0], mu[0], log_var[0]
    return dec, mu, log_var


# --------------------------------------------------------------------------- #
# Parameters: PyTorch-shaped raw params + host-side folding into kernel layout
# --------------------------------------------------------------------------- #
def make_raw_params(key, n_features, z_dim):
    """PyTorch-shaped parameters (float32 stand-ins for the float64 originals).

    BN gamma/beta are randomized (not 1/0) so the folding paths get exercised.
    """
    ks = iter(jax.random.split(key, 32))
    f32 = jnp.float32

    def rnd(shape, scale=0.05):
        return (scale * jax.random.normal(next(ks), shape)).astype(f32)

    return dict(
        en1_w=rnd((64, n_features, 3)), en1_b=rnd((64,)),
        en2_w=rnd((128, 64, 3)), en2_b=rnd((128,)),
        en3_w=rnd((256, 128, 3)), en3_b=rnd((256,)),
        bn1_g=1.0 + rnd((64,), 0.1), bn1_b=rnd((64,), 0.1),
        bn2_g=1.0 + rnd((128,), 0.1), bn2_b=rnd((128,), 0.1),
        bn3_g=1.0 + rnd((256,), 0.1), bn3_b=rnd((256,), 0.1),
        fc_mu_w=rnd((z_dim, 256)), fc_mu_b=rnd((z_dim,)),
        fc_var_w=rnd((z_dim, 256)), fc_var_b=rnd((z_dim,)),
        de1_w=rnd((256, z_dim)), de1_b=rnd((256,)),
        de2_w=rnd((256, 128, 3)), de2_b=rnd((128,)),
        de3_w=rnd((128, 64, 3)), de3_b=rnd((64,)),
        de5_w=rnd((n_features, 64, 3)), de5_b=rnd((n_features,)),
    )


def fold_params(raw, n_features, z_dim):
    """Fold BN affines / biases and pack weights into the kernel's slabs."""
    f32 = jnp.float32
    in_width = _round_up(n_features + z_dim + 1, 128)

    # ---- encoder folds -------------------------------------------------------
    # w1_ext rows: [0:nf] conv1 center tap, row nf+z = conv1 bias (matches the
    # constant-1 lane of the input slab), everything else (incl. eps lanes) 0.
    w1_ext = jnp.zeros((in_width, 64), f32)
    w1_ext = w1_ext.at[:n_features, :].set(raw["en1_w"][:, :, 1].T)
    w1_ext = w1_ext.at[n_features + z_dim, :].set(raw["en1_b"])

    w2_raw = raw["en2_w"][:, :, 1].T                          # (64, 128)
    w2 = raw["bn1_g"][:, None] * w2_raw                       # fold BN1 gamma
    b2 = raw["bn1_b"] @ w2_raw + raw["en2_b"]                 # fold BN1 beta

    w3_raw = raw["en3_w"][:, :, 1].T                          # (128, 256)
    w3 = raw["bn2_g"][:, None] * w3_raw                       # fold BN2 gamma
    # conv3 bias + BN2-beta term are per-channel constants removed by BN3's
    # training-mode mean subtraction (no nonlinearity between en3 and b3).

    wmu = raw["bn3_g"][:, None] * raw["fc_mu_w"].T            # (256, z)
    wvar = raw["bn3_g"][:, None] * raw["fc_var_w"].T
    wml = jnp.concatenate([wmu, wvar], axis=1)                # (256, 2z)
    bml = jnp.concatenate([raw["bn3_b"] @ raw["fc_mu_w"].T + raw["fc_mu_b"],
                           raw["bn3_b"] @ raw["fc_var_w"].T + raw["fc_var_b"]])

    # ---- decoder fused block matrices ---------------------------------------
    wde1 = raw["de1_w"].T.astype(f32)                         # (z, 256)
    bde1 = raw["de1_b"]

    # de2: ConvTranspose1d(256->128, k3, s2, p1, op1), L 1->2 uses taps 1, 2
    wd2 = jnp.concatenate([raw["de2_w"][:, :, 1], raw["de2_w"][:, :, 2]], axis=1)
    bd2 = jnp.tile(raw["de2_b"], 2)

    # de3: ConvTranspose1d(128->64, k3, s2, p1, op1), L 2->4
    k0, k1, k2 = raw["de3_w"][:, :, 0], raw["de3_w"][:, :, 1], raw["de3_w"][:, :, 2]
    z64 = jnp.zeros((128, 64), f32)
    wd3 = jnp.concatenate([
        jnp.concatenate([k1, k2, z64, z64], axis=1),   # rows fed by s0
        jnp.concatenate([z64, k0, k1, k2], axis=1),    # rows fed by s1
    ], axis=0)                                                # (256, 256)
    bd3 = jnp.tile(raw["de3_b"], 4)

    # de5: Conv1d(64->nf, k3, s2, p1), L 4->2
    q0, q1, q2 = (raw["de5_w"][:, :, 0].T, raw["de5_w"][:, :, 1].T,
                  raw["de5_w"][:, :, 2].T)                    # (64, nf)
    znf = jnp.zeros((64, n_features), f32)
    wd5 = jnp.concatenate([
        jnp.concatenate([q1, znf], axis=1),   # rows fed by t0
        jnp.concatenate([q2, q0], axis=1),    # rows fed by t1
        jnp.concatenate([znf, q1], axis=1),   # rows fed by t2
        jnp.concatenate([znf, q2], axis=1),   # rows fed by t3
    ], axis=0)                                                # (256, 2*nf)
    bd5 = jnp.tile(raw["de5_b"], 2)

    # ---- packed K=128 slab: [w1_ext | pad | w3 (two 128-lane halves)] --------
    k13 = max(in_width, 128)
    w13 = jnp.zeros((k13, 128 + 256), f32)
    w13 = w13.at[:in_width, 0:64].set(w1_ext)
    w13 = w13.at[:128, 128:384].set(w3)

    # ---- packed K=256 slab: [wd2 | wd3 | wml | wd5] ---------------------------
    lay256, tot256 = _w256_layout(n_features, z_dim)
    w256 = jnp.zeros((256, tot256), f32)
    for name, arr in (("wd2", wd2), ("wd3", wd3), ("wml", wml), ("wd5", wd5)):
        off, w = lay256[name]
        w256 = w256.at[:, off:off + w].set(arr.astype(f32))

    # ---- pack all remaining per-channel rows into one lane-aligned vector ----
    vlay, vtot = _vec_layout(n_features, z_dim)
    vec = jnp.zeros((1, vtot), f32)
    for name, arr in (("b2", b2), ("bml", bml), ("bde1", bde1),
                      ("bd2", bd2), ("bd3", bd3), ("bd5", bd5)):
        off, w = vlay[name]
        vec = vec.at[0, off:off + w].set(arr.astype(f32))

    return (w13, w2.astype(f32), w256, wde1, vec)


# --------------------------------------------------------------------------- #
# Pure-JAX replica of the PyTorch forward (training-mode BN), for validation
# --------------------------------------------------------------------------- #
def _reference_forward(x, eps, raw, n_features, z_dim):
    lk = lambda v: jnp.where(v > 0, v, NEG_SLOPE * v)

    def conv1d(v, w, b, stride=2, pad=1):          # v:(B,Cin,L) w:(Cout,Cin,K)
        vp = jnp.pad(v, ((0, 0), (0, 0), (pad, pad)))
        K = w.shape[2]
        lout = (vp.shape[2] - K) // stride + 1
        cols = [jnp.einsum("bck,ock->bo", vp[:, :, o * stride:o * stride + K], w) + b
                for o in range(lout)]
        return jnp.stack(cols, axis=-1)

    def conv_t1d(v, w, b, stride=2, pad=1, out_pad=1):   # w:(Cin,Cout,K)
        bsz, _, L = v.shape
        cout, K = w.shape[1], w.shape[2]
        lout = (L - 1) * stride - 2 * pad + K + out_pad
        out = jnp.zeros((bsz, cout, lout), v.dtype)
        for i in range(L):
            for k in range(K):
                o = i * stride - pad + k
                if 0 <= o < lout:
                    out = out.at[:, :, o].add(v[:, :, i] @ w[:, :, k])
        return out + b[None, :, None]

    def bn(v, g, bta):                              # training-mode BatchNorm1d
        mean = jnp.mean(v, axis=(0, 2), keepdims=True)
        var = jnp.var(v, axis=(0, 2), keepdims=True)
        return g[None, :, None] * (v - mean) / jnp.sqrt(var + EPS_BN) + bta[None, :, None]

    B = x.shape[0]
    xr = x.reshape(B, n_features, 1)
    h1 = bn(lk(conv1d(xr, raw["en1_w"], raw["en1_b"])), raw["bn1_g"], raw["bn1_b"])
    h2 = bn(lk(conv1d(h1, raw["en2_w"], raw["en2_b"])), raw["bn2_g"], raw["bn2_b"])
    h3 = bn(conv1d(h2, raw["en3_w"], raw["en3_b"]), raw["bn3_g"], raw["bn3_b"])
    h3f = h3.reshape(B, 256)
    mu = h3f @ raw["fc_mu_w"].T + raw["fc_mu_b"]
    logvar = h3f @ raw["fc_var_w"].T + raw["fc_var_b"]
    z = eps * jnp.exp(0.5 * logvar) + mu
    h4 = lk(z @ raw["de1_w"].T + raw["de1_b"]).reshape(B, 256, 1)
    h5 = conv_t1d(h4, raw["de2_w"], raw["de2_b"])
    h6 = conv_t1d(h5, raw["de3_w"], raw["de3_b"])
    o = jnp.tanh(conv1d(h6, raw["de5_w"], raw["de5_b"]))
    return jnp.mean(o, axis=-1), mu, logvar


if __name__ == "__main__":
    key = jax.random.PRNGKey(0)
    kx, keps, kp = jax.random.split(key, 3)

    # z_dim MUST be 4: CNN_VAE.decode hard-codes z.view(-1, 1, 4).
    # Each grid step is one independent batch (exact whole-batch BN stats);
    # G batches amortize the resident-weight DMAs and are split across the
    # two v7x TensorCores via dimension_semantics=("parallel",).
    G, B, n_features, z_dim = 4, 64, 8, 4

    x = jax.random.normal(kx, (G, B, n_features), dtype=jnp.float32)
    eps = jax.random.normal(keps, (G, B, z_dim), dtype=jnp.float32)

    raw = make_raw_params(kp, n_features, z_dim)
    params = fold_params(raw, n_features, z_dim)

    dec, mu, log_var = cnn_vae_forward(x, eps, params)
    jax.block_until_ready((dec, mu, log_var))

    assert dec.shape == (G, B, n_features)
    assert mu.shape == (G, B, z_dim) and log_var.shape == (G, B, z_dim)
    assert bool(jnp.all(jnp.isfinite(dec)))
    assert bool(jnp.all(jnp.isfinite(mu))) and bool(jnp.all(jnp.isfinite(log_var)))

    # validate the conv->matmul unrolling and BN/bias folding against a pure-JAX
    # replica of the PyTorch forward (tolerance covers default-precision MXU f32).
    for g in range(G):
        r_dec, r_mu, r_lv = _reference_forward(x[g], eps[g], raw, n_features, z_dim)
        d0 = float(jnp.max(jnp.abs(dec[g] - r_dec)))
        d1 = float(jnp.max(jnp.abs(mu[g] - r_mu)))
        d2 = float(jnp.max(jnp.abs(log_var[g] - r_lv)))
        assert bool(jnp.allclose(dec[g], r_dec, atol=3e-2, rtol=3e-2)), d0
        assert bool(jnp.allclose(mu[g], r_mu, atol=3e-2, rtol=3e-2)), d1
        assert bool(jnp.allclose(log_var[g], r_lv, atol=3e-2, rtol=3e-2)), d2

    print("KERNEL_OK")
</pallas_src>

<mosaic_0001>
module attributes {stable_mosaic.version = 11 : i64} {
  func.func @kernel(%arg0: i32, %arg1: memref<1x64x128xf32, #tpu.memory_space<vmem>>, %arg2: memref<128x384xf32, #tpu.memory_space<vmem>>, %arg3: memref<64x128xf32, #tpu.memory_space<vmem>>, %arg4: memref<256x768xf32, #tpu.memory_space<vmem>>, %arg5: memref<4x256xf32, #tpu.memory_space<vmem>>, %arg6: memref<1x1152xf32, #tpu.memory_space<vmem>>, %arg7: memref<1x64x128xf32, #tpu.memory_space<vmem>>) attributes {dimension_semantics = [#tpu.dimension_semantics<parallel>], iteration_bounds = array<i64: 4>, scalar_prefetch = 0 : i64, scratch_operands = 0 : i64, tpu.core_type = #tpu.core_type<tc>, window_params = [{transform_indices = @transform_0, window_bounds = array<i64: 1, 64, 128>}, {pipeline_mode = #tpu.pipeline_mode<synchronous>, transform_indices = @transform_1, window_bounds = array<i64: 128, 384>}, {pipeline_mode = #tpu.pipeline_mode<synchronous>, transform_indices = @transform_2, window_bounds = array<i64: 64, 128>}, {pipeline_mode = #tpu.pipeline_mode<synchronous>, transform_indices = @transform_3, window_bounds = array<i64: 256, 768>}, {pipeline_mode = #tpu.pipeline_mode<synchronous>, transform_indices = @transform_4, window_bounds = array<i64: 4, 256>}, {pipeline_mode = #tpu.pipeline_mode<synchronous>, transform_indices = @transform_5, window_bounds = array<i64: 1, 1152>}, {transform_indices = @transform_6, window_bounds = array<i64: 1, 64, 128>}]} {
    %c0 = arith.constant 0 : index
    %c0_0 = arith.constant 0 : index
    %c0_1 = arith.constant 0 : index
    %0 = vector.load %arg1[%c0, %c0_0, %c0_1] : memref<1x64x128xf32, #tpu.memory_space<vmem>>, vector<1x64x128xf32>
    %1 = vector.shape_cast %0 : vector<1x64x128xf32> to vector<64x128xf32>
    %2 = vector.extract_strided_slice %1 {offsets = [0, 8], sizes = [64, 4], strides = [1, 1]} : vector<64x128xf32> to vector<64x4xf32>
    %c0_2 = arith.constant 0 : index
    %c0_3 = arith.constant 0 : index
    %3 = vector.load %arg2[%c0_2, %c0_3] : memref<128x384xf32, #tpu.memory_space<vmem>>, vector<128x64xf32>
    %cst = arith.constant dense<0.000000e+00> : vector<64x64xf32>
    %4 = tpu.matmul %1, %3, %cst {dimension_numbers = #tpu.dot_dimension_numbers<[1], [0], [0], [1], [0, 0, 1, 1], [], []>} : vector<64x128xf32>, vector<128x64xf32>, vector<64x64xf32> -> vector<64x64xf32>
    %cst_4 = arith.constant 0.000000e+00 : f32
    %5 = vector.broadcast %cst_4 : f32 to vector<64x64xf32>
    %6 = arith.cmpf ogt, %4, %5 : vector<64x64xf32>
    %cst_5 = arith.constant 0.00999999977 : f32
    %7 = vector.broadcast %cst_5 : f32 to vector<64x64xf32>
    %8 = arith.mulf %7, %4 : vector<64x64xf32>
    %9 = arith.select %6, %4, %8 : vector<64x64xi1>, vector<64x64xf32>
    %cst_6 = arith.constant dense<0.000000e+00> : vector<64xf32>
    %10 = vector.multi_reduction <add>, %9, %cst_6 [0] : vector<64x64xf32> to vector<64xf32>
    %11 = vector.shape_cast %10 : vector<64xf32> to vector<1x64xf32>
    %cst_7 = arith.constant 6.400000e+01 : f32
    %12 = vector.broadcast %cst_7 : f32 to vector<1x64xf32>
    %13 = arith.divf %11, %12 : vector<1x64xf32>
    %14 = arith.mulf %9, %9 : vector<64x64xf32>
    %cst_8 = arith.constant dense<0.000000e+00> : vector<64xf32>
    %15 = vector.multi_reduction <add>, %14, %cst_8 [0] : vector<64x64xf32> to vector<64xf32>
    %16 = vector.shape_cast %15 : vector<64xf32> to vector<1x64xf32>
    %cst_9 = arith.constant 6.400000e+01 : f32
    %17 = vector.broadcast %cst_9 : f32 to vector<1x64xf32>
    %18 = arith.divf %16, %17 : vector<1x64xf32>
    %19 = arith.mulf %13, %13 : vector<1x64xf32>
    %20 = arith.subf %18, %19 : vector<1x64xf32>
    %21 = vector.broadcast %13 : vector<1x64xf32> to vector<64x64xf32>
    %22 = arith.subf %9, %21 : vector<64x64xf32>
    %cst_10 = arith.constant 9.99999974E-6 : f32
    %23 = vector.broadcast %cst_10 : f32 to vector<1x64xf32>
    %24 = arith.addf %20, %23 : vector<1x64xf32>
    %25 = math.rsqrt %24 : vector<1x64xf32>
    %26 = vector.broadcast %25 : vector<1x64xf32> to vector<64x64xf32>
    %27 = arith.mulf %22, %26 : vector<64x64xf32>
    %c0_11 = arith.constant 0 : index
    %c0_12 = arith.constant 0 : index
    %28 = vector.load %arg3[%c0_11, %c0_12] : memref<64x128xf32, #tpu.memory_space<vmem>>, vector<64x128xf32>
    %cst_13 = arith.constant dense<0.000000e+00> : vector<64x128xf32>
    %29 = tpu.matmul %27, %28, %cst_13 {dimension_numbers = #tpu.dot_dimension_numbers<[1], [0], [0], [1], [0, 0, 1, 1], [], []>} : vector<64x64xf32>, vector<64x128xf32>, vector<64x128xf32> -> vector<64x128xf32>
    %c0_14 = arith.constant 0 : index
    %c0_15 = arith.constant 0 : index
    %30 = vector.load %arg6[%c0_14, %c0_15] : memref<1x1152xf32, #tpu.memory_space<vmem>>, vector<1x128xf32>
    %31 = vector.broadcast %30 : vector<1x128xf32> to vector<64x128xf32>
    %32 = arith.addf %29, %31 : vector<64x128xf32>
    %cst_16 = arith.constant 0.000000e+00 : f32
    %33 = vector.broadcast %cst_16 : f32 to vector<64x128xf32>
    %34 = arith.cmpf ogt, %32, %33 : vector<64x128xf32>
    %cst_17 = arith.constant 0.00999999977 : f32
    %35 = vector.broadcast %cst_17 : f32 to vector<64x128xf32>
    %36 = arith.mulf %35, %32 : vector<64x128xf32>
    %37 = arith.select %34, %32, %36 : vector<64x128xi1>, vector<64x128xf32>
    %cst_18 = arith.constant dense<0.000000e+00> : vector<128xf32>
    %38 = vector.multi_reduction <add>, %37, %cst_18 [0] : vector<64x128xf32> to vector<128xf32>
    %39 = vector.shape_cast %38 : vector<128xf32> to vector<1x128xf32>
    %cst_19 = arith.constant 6.400000e+01 : f32
    %40 = vector.broadcast %cst_19 : f32 to vector<1x128xf32>
    %41 = arith.divf %39, %40 : vector<1x128xf32>
    %42 = arith.mulf %37, %37 : vector<64x128xf32>
    %cst_20 = arith.constant dense<0.000000e+00> : vector<128xf32>
    %43 = vector.multi_reduction <add>, %42, %cst_20 [0] : vector<64x128xf32> to vector<128xf32>
    %44 = vector.shape_cast %43 : vector<128xf32> to vector<1x128xf32>
    %cst_21 = arith.constant 6.400000e+01 : f32
    %45 = vector.broadcast %cst_21 : f32 to vector<1x128xf32>
    %46 = arith.divf %44, %45 : vector<1x128xf32>
    %47 = arith.mulf %41, %41 : vector<1x128xf32>
    %48 = arith.subf %46, %47 : vector<1x128xf32>
    %49 = vector.broadcast %41 : vector<1x128xf32> to vector<64x128xf32>
    %50 = arith.subf %37, %49 : vector<64x128xf32>
    %cst_22 = arith.constant 9.99999974E-6 : f32
    %51 = vector.broadcast %cst_22 : f32 to vector<1x128xf32>
    %52 = arith.addf %48, %51 : vector<1x128xf32>
    %53 = math.rsqrt %52 : vector<1x128xf32>
    %54 = vector.broadcast %53 : vector<1x128xf32> to vector<64x128xf32>
    %55 = arith.mulf %50, %54 : vector<64x128xf32>
    %c0_23 = arith.constant 0 : index
    %c128 = arith.constant 128 : index
    %56 = vector.load %arg2[%c0_23, %c128] : memref<128x384xf32, #tpu.memory_space<vmem>>, vector<128x128xf32>
    %cst_24 = arith.constant dense<0.000000e+00> : vector<64x128xf32>
    %57 = tpu.matmul %55, %56, %cst_24 {dimension_numbers = #tpu.dot_dimension_numbers<[1], [0], [0], [1], [0, 0, 1, 1], [], []>} : vector<64x128xf32>, vector<128x128xf32>, vector<64x128xf32> -> vector<64x128xf32>
    %cst_25 = arith.constant dense<0.000000e+00> : vector<128xf32>
    %58 = vector.multi_reduction <add>, %57, %cst_25 [0] : vector<64x128xf32> to vector<128xf32>
    %59 = vector.shape_cast %58 : vector<128xf32> to vector<1x128xf32>
    %cst_26 = arith.constant 6.400000e+01 : f32
    %60 = vector.broadcast %cst_26 : f32 to vector<1x128xf32>
    %61 = arith.divf %59, %60 : vector<1x128xf32>
    %62 = arith.mulf %57, %57 : vector<64x128xf32>
    %cst_27 = arith.constant dense<0.000000e+00> : vector<128xf32>
    %63 = vector.multi_reduction <add>, %62, %cst_27 [0] : vector<64x128xf32> to vector<128xf32>
    %64 = vector.shape_cast %63 : vector<128xf32> to vector<1x128xf32>
    %cst_28 = arith.constant 6.400000e+01 : f32
    %65 = vector.broadcast %cst_28 : f32 to vector<1x128xf32>
    %66 = arith.divf %64, %65 : vector<1x128xf32>
    %67 = arith.mulf %61, %61 : vector<1x128xf32>
    %68 = arith.subf %66, %67 : vector<1x128xf32>
    %69 = vector.broadcast %61 : vector<1x128xf32> to vector<64x128xf32>
    %70 = arith.subf %57, %69 : vector<64x128xf32>
    %cst_29 = arith.constant 9.99999974E-6 : f32
    %71 = vector.broadcast %cst_29 : f32 to vector<1x128xf32>
    %72 = arith.addf %68, %71 : vector<1x128xf32>
    %73 = math.rsqrt %72 : vector<1x128xf32>
    %74 = vector.broadcast %73 : vector<1x128xf32> to vector<64x128xf32>
    %75 = arith.mulf %70, %74 : vector<64x128xf32>
    %c0_30 = arith.constant 0 : index
    %c256 = arith.constant 256 : index
    %76 = vector.load %arg2[%c0_30, %c256] : memref<128x384xf32, #tpu.memory_space<vmem>>, vector<128x128xf32>
    %cst_31 = arith.constant dense<0.000000e+00> : vector<64x128xf32>
    %77 = tpu.matmul %55, %76, %cst_31 {dimension_numbers = #tpu.dot_dimension_numbers<[1], [0], [0], [1], [0, 0, 1, 1], [], []>} : vector<64x128xf32>, vector<128x128xf32>, vector<64x128xf32> -> vector<64x128xf32>
    %cst_32 = arith.constant dense<0.000000e+00> : vector<128xf32>
    %78 = vector.multi_reduction <add>, %77, %cst_32 [0] : vector<64x128xf32> to vector<128xf32>
    %79 = vector.shape_cast %78 : vector<128xf32> to vector<1x128xf32>
    %cst_33 = arith.constant 6.400000e+01 : f32
    %80 = vector.broadcast %cst_33 : f32 to vector<1x128xf32>
    %81 = arith.divf %79, %80 : vector<1x128xf32>
    %82 = arith.mulf %77, %77 : vector<64x128xf32>
    %cst_34 = arith.constant dense<0.000000e+00> : vector<128xf32>
    %83 = vector.multi_reduction <add>, %82, %cst_34 [0] : vector<64x128xf32> to vector<128xf32>
    %84 = vector.shape_cast %83 : vector<128xf32> to vector<1x128xf32>
    %cst_35 = arith.constant 6.400000e+01 : f32
    %85 = vector.broadcast %cst_35 : f32 to vector<1x128xf32>
    %86 = arith.divf %84, %85 : vector<1x128xf32>
    %87 = arith.mulf %81, %81 : vector<1x128xf32>
    %88 = arith.subf %86, %87 : vector<1x128xf32>
    %89 = vector.broadcast %81 : vector<1x128xf32> to vector<64x128xf32>
    %90 = arith.subf %77, %89 : vector<64x128xf32>
    %cst_36 = arith.constant 9.99999974E-6 : f32
    %91 = vector.broadcast %cst_36 : f32 to vector<1x128xf32>
    %92 = arith.addf %88, %91 : vector<1x128xf32>
    %93 = math.rsqrt %92 : vector<1x128xf32>
    %94 = vector.broadcast %93 : vector<1x128xf32> to vector<64x128xf32>
    %95 = arith.mulf %90, %94 : vector<64x128xf32>
    %c0_37 = arith.constant 0 : index
    %c512 = arith.constant 512 : index
    %96 = vector.load %arg4[%c0_37, %c512] : memref<256x768xf32, #tpu.memory_space<vmem>>, vector<128x8xf32>
    %cst_38 = arith.constant dense<0.000000e+00> : vector<64x8xf32>
    %97 = tpu.matmul %75, %96, %cst_38 {dimension_numbers = #tpu.dot_dimension_numbers<[1], [0], [0], [1], [0, 0, 1, 1], [], []>} : vector<64x128xf32>, vector<128x8xf32>, vector<64x8xf32> -> vector<64x8xf32>
    %c128_39 = arith.constant 128 : index
    %c512_40 = arith.constant 512 : index
    %98 = vector.load %arg4[%c128_39, %c512_40] : memref<256x768xf32, #tpu.memory_space<vmem>>, vector<128x8xf32>
    %cst_41 = arith.constant dense<0.000000e+00> : vector<64x8xf32>
    %99 = tpu.matmul %95, %98, %cst_41 {dimension_numbers = #tpu.dot_dimension_numbers<[1], [0], [0], [1], [0, 0, 1, 1], [], []>} : vector<64x128xf32>, vector<128x8xf32>, vector<64x8xf32> -> vector<64x8xf32>
    %100 = arith.addf %97, %99 : vector<64x8xf32>
    %c0_42 = arith.constant 0 : index
    %c128_43 = arith.constant 128 : index
    %101 = vector.load %arg6[%c0_42, %c128_43] : memref<1x1152xf32, #tpu.memory_space<vmem>>, vector<1x8xf32>
    %102 = vector.broadcast %101 : vector<1x8xf32> to vector<64x8xf32>
    %103 = arith.addf %100, %102 : vector<64x8xf32>
    %104 = vector.extract_strided_slice %103 {offsets = [0, 0], sizes = [64, 4], strides = [1, 1]} : vector<64x8xf32> to vector<64x4xf32>
    %105 = vector.extract_strided_slice %103 {offsets = [0, 4], sizes = [64, 4], strides = [1, 1]} : vector<64x8xf32> to vector<64x4xf32>
    %cst_44 = arith.constant 5.000000e-01 : f32
    %106 = vector.broadcast %cst_44 : f32 to vector<64x4xf32>
    %107 = arith.mulf %106, %105 : vector<64x4xf32>
    %108 = math.exp %107 : vector<64x4xf32>
    %109 = arith.mulf %2, %108 : vector<64x4xf32>
    %110 = arith.addf %109, %104 : vector<64x4xf32>
    %c0_45 = arith.constant 0 : index
    %c0_46 = arith.constant 0 : index
    %111 = vector.load %arg5[%c0_45, %c0_46] : memref<4x256xf32, #tpu.memory_space<vmem>>, vector<4x256xf32>
    %cst_47 = arith.constant dense<0.000000e+00> : vector<64x256xf32>
    %112 = tpu.matmul %110, %111, %cst_47 {dimension_numbers = #tpu.dot_dimension_numbers<[1], [0], [0], [1], [0, 0, 1, 1], [], []>} : vector<64x4xf32>, vector<4x256xf32>, vector<64x256xf32> -> vector<64x256xf32>
    %c0_48 = arith.constant 0 : index
    %c256_49 = arith.constant 256 : index
    %113 = vector.load %arg6[%c0_48, %c256_49] : memref<1x1152xf32, #tpu.memory_space<vmem>>, vector<1x256xf32>
    %114 = vector.broadcast %113 : vector<1x256xf32> to vector<64x256xf32>
    %115 = arith.addf %112, %114 : vector<64x256xf32>
    %cst_50 = arith.constant 0.000000e+00 : f32
    %116 = vector.broadcast %cst_50 : f32 to vector<64x256xf32>
    %117 = arith.cmpf ogt, %115, %116 : vector<64x256xf32>
    %cst_51 = arith.constant 0.00999999977 : f32
    %118 = vector.broadcast %cst_51 : f32 to vector<64x256xf32>
    %119 = arith.mulf %118, %115 : vector<64x256xf32>
    %120 = arith.select %117, %115, %119 : vector<64x256xi1>, vector<64x256xf32>
    %c0_52 = arith.constant 0 : index
    %c0_53 = arith.constant 0 : index
    %121 = vector.load %arg4[%c0_52, %c0_53] : memref<256x768xf32, #tpu.memory_space<vmem>>, vector<256x256xf32>
    %cst_54 = arith.constant dense<0.000000e+00> : vector<64x256xf32>
    %122 = tpu.matmul %120, %121, %cst_54 {dimension_numbers = #tpu.dot_dimension_numbers<[1], [0], [0], [1], [0, 0, 1, 1], [], []>} : vector<64x256xf32>, vector<256x256xf32>, vector<64x256xf32> -> vector<64x256xf32>
    %c0_55 = arith.constant 0 : index
    %c512_56 = arith.constant 512 : index
    %123 = vector.load %arg6[%c0_55, %c512_56] : memref<1x1152xf32, #tpu.memory_space<vmem>>, vector<1x256xf32>
    %124 = vector.broadcast %123 : vector<1x256xf32> to vector<64x256xf32>
    %125 = arith.addf %122, %124 : vector<64x256xf32>
    %c0_57 = arith.constant 0 : index
    %c256_58 = arith.constant 256 : index
    %126 = vector.load %arg4[%c0_57, %c256_58] : memref<256x768xf32, #tpu.memory_space<vmem>>, vector<256x256xf32>
    %cst_59 = arith.constant dense<0.000000e+00> : vector<64x256xf32>
    %127 = tpu.matmul %125, %126, %cst_59 {dimension_numbers = #tpu.dot_dimension_numbers<[1], [0], [0], [1], [0, 0, 1, 1], [], []>} : vector<64x256xf32>, vector<256x256xf32>, vector<64x256xf32> -> vector<64x256xf32>
    %c0_60 = arith.constant 0 : index
    %c768 = arith.constant 768 : index
    %128 = vector.load %arg6[%c0_60, %c768] : memref<1x1152xf32, #tpu.memory_space<vmem>>, vector<1x256xf32>
    %129 = vector.broadcast %128 : vector<1x256xf32> to vector<64x256xf32>
    %130 = arith.addf %127, %129 : vector<64x256xf32>
    %c0_61 = arith.constant 0 : index
    %c640 = arith.constant 640 : index
    %131 = vector.load %arg4[%c0_61, %c640] : memref<256x768xf32, #tpu.memory_space<vmem>>, vector<256x16xf32>
    %cst_62 = arith.constant dense<0.000000e+00> : vector<64x16xf32>
    %132 = tpu.matmul %130, %131, %cst_62 {dimension_numbers = #tpu.dot_dimension_numbers<[1], [0], [0], [1], [0, 0, 1, 1], [], []>} : vector<64x256xf32>, vector<256x16xf32>, vector<64x16xf32> -> vector<64x16xf32>
    %c0_63 = arith.constant 0 : index
    %c1024 = arith.constant 1024 : index
    %133 = vector.load %arg6[%c0_63, %c1024] : memref<1x1152xf32, #tpu.memory_space<vmem>>, vector<1x16xf32>
    %134 = vector.broadcast %133 : vector<1x16xf32> to vector<64x16xf32>
    %135 = arith.addf %132, %134 : vector<64x16xf32>
    %136 = math.tanh %135 : vector<64x16xf32>
    %137 = vector.extract_strided_slice %136 {offsets = [0, 0], sizes = [64, 8], strides = [1, 1]} : vector<64x16xf32> to vector<64x8xf32>
    %138 = vector.extract_strided_slice %136 {offsets = [0, 8], sizes = [64, 8], strides = [1, 1]} : vector<64x16xf32> to vector<64x8xf32>
    %139 = arith.addf %137, %138 : vector<64x8xf32>
    %cst_64 = arith.constant 5.000000e-01 : f32
    %140 = vector.broadcast %cst_64 : f32 to vector<64x8xf32>
    %141 = arith.mulf %140, %139 : vector<64x8xf32>
    %cst_65 = arith.constant 0.000000e+00 : f32
    %142 = vector.broadcast %cst_65 : f32 to vector<64x128xf32>
    %c0_66 = arith.constant 0 : index
    %c0_67 = arith.constant 0 : index
    %c0_68 = arith.constant 0 : index
    %143 = vector.load %arg7[%c0_66, %c0_67, %c0_68] : memref<1x64x128xf32, #tpu.memory_space<vmem>>, vector<1x64x128xf32>
    %144 = vector.shape_cast %143 : vector<1x64x128xf32> to vector<64x128xf32>
    %145 = vector.shape_cast %142 : vector<64x128xf32> to vector<1x64x128xf32>
    tpu.vector_store %arg7[%c0_66, %c0_67, %c0_68], %145 {strides = array<i32>} : memref<1x64x128xf32, #tpu.memory_space<vmem>>, vector<1x64x128xf32>,
    %c0_69 = arith.constant 0 : index
    %c0_70 = arith.constant 0 : index
    %c0_71 = arith.constant 0 : index
    %146 = vector.load %arg7[%c0_69, %c0_70, %c0_71] : memref<1x64x128xf32, #tpu.memory_space<vmem>>, vector<1x64x8xf32>
    %147 = vector.shape_cast %146 : vector<1x64x8xf32> to vector<64x8xf32>
    %148 = vector.shape_cast %141 : vector<64x8xf32> to vector<1x64x8xf32>
    tpu.vector_store %arg7[%c0_69, %c0_70, %c0_71], %148 {strides = array<i32>} : memref<1x64x128xf32, #tpu.memory_space<vmem>>, vector<1x64x8xf32>,
    %c0_72 = arith.constant 0 : index
    %c0_73 = arith.constant 0 : index
    %c8 = arith.constant 8 : index
    %149 = vector.load %arg7[%c0_72, %c0_73, %c8] : memref<1x64x128xf32, #tpu.memory_space<vmem>>, vector<1x64x8xf32>
    %150 = vector.shape_cast %149 : vector<1x64x8xf32> to vector<64x8xf32>
    %151 = vector.shape_cast %103 : vector<64x8xf32> to vector<1x64x8xf32>
    tpu.vector_store %arg7[%c0_72, %c0_73, %c8], %151 {strides = array<i32>} : memref<1x64x128xf32, #tpu.memory_space<vmem>>, vector<1x64x8xf32>,
    return
  }
  func.func @transform_0(%arg0: i32) -> (i32, i32, i32) {
    %c0_i32 = arith.constant 0 : i32
    %c0_i32_0 = arith.constant 0 : i32
    %c0_i32_1 = arith.constant 0 : i32
    return %arg0, %c0_i32, %c0_i32_0 : i32, i32, i32
  }
  func.func @transform_1(%arg0: i32) -> (i32, i32) {
    %c0_i32 = arith.constant 0 : i32
    %c0_i32_0 = arith.constant 0 : i32
    %c0_i32_1 = arith.constant 0 : i32
    return %c0_i32, %c0_i32_0 : i32, i32
  }
  func.func @transform_2(%arg0: i32) -> (i32, i32) {
    %c0_i32 = arith.constant 0 : i32
    %c0_i32_0 = arith.constant 0 : i32
    %c0_i32_1 = arith.constant 0 : i32
    return %c0_i32, %c0_i32_0 : i32, i32
  }
  func.func @transform_3(%arg0: i32) -> (i32, i32) {
    %c0_i32 = arith.constant 0 : i32
    %c0_i32_0 = arith.constant 0 : i32
    %c0_i32_1 = arith.constant 0 : i32
    return %c0_i32, %c0_i32_0 : i32, i32
  }
  func.func @transform_4(%arg0: i32) -> (i32, i32) {
    %c0_i32 = arith.constant 0 : i32
    %c0_i32_0 = arith.constant 0 : i32
    %c0_i32_1 = arith.constant 0 : i32
    return %c0_i32, %c0_i32_0 : i32, i32
  }
  func.func @transform_5(%arg0: i32) -> (i32, i32) {
    %c0_i32 = arith.constant 0 : i32
    %c0_i32_0 = arith.constant 0 : i32
    %c0_i32_1 = arith.constant 0 : i32
    return %c0_i32, %c0_i32_0 : i32, i32
  }
  func.func @transform_6(%arg0: i32) -> (i32, i32, i32) {
    %c0_i32 = arith.constant 0 : i32
    %c0_i32_0 = arith.constant 0 : i32
    %c0_i32_1 = arith.constant 0 : i32
    return %arg0, %c0_i32, %c0_i32_0 : i32, i32, i32
  }
}

</mosaic_0001>

<bundles_post_ra>
// kernel: tpu_custom_call.1
= control target key start
LH: loop header
LB: loop body
LE: loop exit
PB: predicated region body
PF: predicated region fallthrough
CT: control target
= control target key end

     0   :  { %11 = vsyncpa [#allocation3], 0  ;;  %s3432_s0 = inlined_call_operand.hbm [shape: f32[4,64,128], index: 0, kind: input, shape index: {}]   ;;  %s3433_s1 = inlined_call_operand.hbm [shape: f32[128,384], index: 1, kind: input, shape index: {}]   ;;  %s3434_s2 = inlined_call_operand.hbm [shape: f32[64,128], index: 2, kind: input, shape index: {}]   ;;  %s3435_s3 = inlined_call_operand.hbm [shape: f32[256,768], index: 3, kind: input, shape index: {}]   ;;  %s3436_s4 = inlined_call_operand.hbm [shape: f32[4,256], index: 4, kind: input, shape index: {}]   ;;  %s3437_s5 = inlined_call_operand.hbm [shape: f32[1,1152], index: 5, kind: input, shape index: {}]   ;;  %s3438_s6 = inlined_call_operand.hbm [shape: f32[4,64,128], index: 6, kind: output, shape index: {}]  }
   0x1   :  { %13 = vsyncpa [#allocation3 + $0x1], 0 }
   0x2   :  { %14 = vsyncpa [#allocation6], 0 }
   0x3   :  { %15 = vsyncpa [#allocation9], 0 }
   0x4   :  { %16 = vsyncpa [#allocation12], 0 }
   0x5   :  { %17 = vsyncpa [#allocation4], 0 }
   0x6   :  { %19 = vsyncpa [#allocation4 + $0x1], 0  ;;  %s2728_s21 = smov 0   ;;  %s2730_s22 = smov 0  }
   0x7   :  { %s2732_s23 = smov 0   ;;  %s2734_s24 = smov 0  }
   0x8 LB: > { %s198_s27 = sshll.u32 %s3433_s1, 4  ;;  %s2752_s28 = sadd.s32 4294967295, %s2674_s24   ;;  %s2674_s24 = sphi %s2734_s24, %s3452_s24   ;;  %s2670_s23 = sphi %s2732_s23, %s3451_s23   ;;  %s2666_s22 = sphi %s2730_s22, %s3450_s22   ;;  %s2662_s21 = sphi %s2728_s21, %s3449_s21   ;;  %s199_s27 = int_to_ptr.hbm [resolvable:$true] %s198_s27 }
   0x9   : > { %p2162_p0 = scmp.ge.s32.totalorder %s2674_s24, 1  ;;  %p46_p1 = scmp.eq.s32.totalorder %s2752_s28, 0 }
   0xa   : > { %p187_p2 = scmp.lt.s32.totalorder %s2674_s24, 5  ;;  %s2676_s30 = smov [#allocation5]  }
   0xb   : > { %s200_s7 = sshll.u32 %s2676_s30, 4  ;;  %s226_s10 = sshll.u32 %s3435_s3, 4  ;;  %s201_s7 = int_to_ptr.vmem [resolvable:$true] %s200_s7  ;;  %s227_s10 = int_to_ptr.hbm [resolvable:$true] %s226_s10 }
   0xc   : > { %p2757_p3 = pnand %p2162_p0, %p187_p2  ;;  %s2677_s12 = smov [#allocation8]  }
   0xd   : > { %s228_s13 = sshll.u32 %s2677_s12, 4  ;;  %s2678_s14 = smov 384   ;;  %s229_s13 = int_to_ptr.vmem [resolvable:$true] %s228_s13 }
   0xe   : > { %p2278_p4 = pneg %p2757_p3  ;;  %s2679_s15 = smov 24  }
   0xf   : > { %s2680_s16 = smov 768   ;;  %s2681_s17 = smov 48  }
  0x10   : > { %p2768_p5 = pnand %p2278_p4, %p46_p1  ;;  %s212_s20 = sshll.u32 %s3434_s2, 4  ;;  %s213_s20 = int_to_ptr.hbm [resolvable:$true] %s212_s20 }
  0x11   : > { %s2682_s25 = smov [#allocation7]   ;;  %s3440_s9 = smov 8  }
  0x12   : > { %2281 = dma.hbm_to_vmem [thread:$0]  (!%p2768_p5), %s199_s27, 6144, %s201_s7, [#allocation6], %s2678_s14, %s2678_s14, %s2679_s15  }
  0x13   : > { %2287 = dma.hbm_to_vmem [thread:$0]  (!%p2768_p5), %s227_s10, 24576, %s229_s13, [#allocation9], %s2680_s16, %s2680_s16, %s2681_s17  }
  0x14   : > { %s214_s26 = sshll.u32 %s2682_s25, 4  ;;  %s241_s27 = sshll.u32 %s3436_s4, 4  ;;  %s215_s26 = int_to_ptr.vmem [resolvable:$true] %s214_s26  ;;  %s242_s27 = int_to_ptr.hbm [resolvable:$true] %s241_s27 }
  0x15   : > { %s3439_s7 = smov 128   ;;  %s2685_s10 = smov [#allocation10]  }
  0x16   : > { %2284 = dma.hbm_to_vmem [thread:$0]  (!%p2768_p5), %s213_s20, 1024, %s215_s26, [#allocation6], %s3439_s7, %s3439_s7, %s3440_s9  }
  0x17   : > { %s243_s12 = sshll.u32 %s2685_s10, 4  ;;  %s253_s15 = sshll.u32 %s3437_s5, 4  ;;  %s244_s12 = int_to_ptr.vmem [resolvable:$true] %s243_s12  ;;  %s254_s15 = int_to_ptr.hbm [resolvable:$true] %s253_s15 }
  0x18   : > { %2290 = dma.hbm_to_vmem [thread:$0]  (!%p2768_p5), %s242_s27, 128, %s244_s12, [#allocation9]  }
  0x19   : > { %s2686_s16 = smov [#allocation11]   ;;  %s2161_s18 = sadd.s32 4294967294, %s2674_s24  }
  0x1a   : > { %s255_s17 = sshll.u32 %s2686_s16, 4  ;;  %s2796_s19 = sadd.s32 1, %s2674_s24   ;;  %s256_s17 = int_to_ptr.vmem [resolvable:$true] %s255_s17 }
  0x1b   : > { %2293 = dma.hbm_to_vmem [thread:$0]  (!%p2768_p5), %s254_s15, 144, %s256_s17, [#allocation12]  }
  0x1c   : > { %s32_s20 = sadd.s32 1, %s2670_s23  ;;  %s29_s25 = ssub.s32 %s2674_s24, %s2796_s19 }
  0x1d   : > { %p39_p6 = scmp.ne.s32.totalorder %s2670_s23, %s2666_s22  ;;  %p30_p7 = scmp.eq.s32.totalorder %s29_s25, 0 }
  0x1e   : > { %p40_p8 = scmp.eq.s32.totalorder %s2674_s24, 0  ;;  %p45_p9 = scmp.ne.s32.totalorder %s2666_s22, %s2662_s21 }
  0x1f   : > { %p174_p10 = scmp.eq.s32.totalorder %s2752_s28, 3  ;;  %p180_p13 = scmp.eq.s32.totalorder %s2161_s18, 3 }
  0x20   : > { %s2808_s26 = scalar_select %p30_p7, %s2670_s23, %s32_s20  }
  0x21   : > { %p2812_p11 = por %p46_p1, %p45_p9  ;;  %p2816_p12 = por %p174_p10, %p39_p6 }
  0x22   : > { %p41_p0 = por %p40_p8, %p39_p6  ;;  %s266_s8 = sand.u32 1, %s2670_s23  }
  0x23   : > { %p2821_p2 = por %p180_p13, %p45_p9  ;;  %p2307_p4 = scmp.lt.s32.totalorder %s2674_s24, 4 }
  0x24   : > { %s2169_s10 = sshll.u32 %s266_s8, 6  ;;  %s2211_s12 = sshll.u32 %s2674_s24, 6 }
  0x25   : > { %s275_s15 = scalar_lea.hbm %s3432_s0, %s2211_s12  ;;  %s270_s17 = scalar_lea.vmem [#allocation2], %s2169_s10 }
  0x26   : > { %s276_s16 = sshll.u32 %s275_s15, 4  ;;  %s278_s20 = sshll.u32 %s270_s17, 4  ;;  %s277_s16 = int_to_ptr.hbm [resolvable:$true] %s276_s16  ;;  %s279_s20 = int_to_ptr.vmem [resolvable:$true] %s278_s20 }
  0x27   : > { %p2830_p5 = pnand %p2307_p4, %p41_p0  ;;  %s267_s25 = scalar_lea.sflag [#allocation3], %s266_s8 }
  0x28   : > { %s2566_s7 = sshra.s32 %s277_s16, 4  ;;  %s2573_s10 = scalar_lea.hbm %s3432_s0, 256  ;;  %s2567_s7 = int_to_ptr.hbm [resolvable:$true] %s2566_s7 }
  0x29   : > { %s2568_s9 = scalar_lea.hbm %s2567_s7, 64  ;;  %p2570_p7 = pneg %p2830_p5 }
  0x2a   : > { %p2569_p6 = scmp.ne.s32.totalorder %s2567_s7, %s2568_s9  ;;  %p2574_p10 = scmp.lt.s32.totalorder %s2567_s7, %s3432_s0 }
  0x2b   : > { %p2575_p13 = scmp.lt.s32.totalorder %s2573_s10, %s2568_s9 }
  0x2c   : > { %p2571_p8 = pnand %p2570_p7, %p2569_p6 }
  0x2d   : > { %p2576_p0 = por %p2575_p13, %p2574_p10 }
  0x2e   : > { %p2572_p9 = pneg %p2571_p8 }
  0x30   : > { %p2577_p4 = pnand %p2576_p0, %p2572_p9 }
  0x32   : > { %2580 = shalt.err (!%p2577_p4)
}
  0x33   : > { %s3447_s8 = smov 8   ;;  %s3448_s17 = smov 128  }
  0x34   : > { %2297 = dma.hbm_to_vmem [thread:$0]  (!%p2830_p5), %s277_s16, 1024, %s279_s20, %s267_s25, %s3448_s17, %s3448_s17, %s3447_s8  }
  0x35   : > { %290 = sbr.rel (%p2757_p3) target bundleno = 1907 (0x773), region = 44  ;;  %s2850_s12 = sand.u32 (!%p2757_p3), 1, %s2666_s22  }
  0x36   : > { %s2173_s7 = sshll.u32 (!%p2757_p3), %s2850_s12, 6  ;;  %s293_s9 = scalar_lea.sflag (!%p2757_p3), [#allocation3], %s2850_s12 }
  0x37   : > { %s2856_s13 = scalar_lea.vmem (!%p2757_p3), [#allocation2], %s2173_s7 }
  0x3a   : > { %2641 = dma.done.wait (%p2812_p11), %s293_s9, 1024  }
  0x3b   : > { %2643 = vsyncadd (%p2812_p11), %s293_s9, 4294966272 }
  0x3c   : > { %2645 = dma.done.wait (%p46_p1), [#allocation6], 7168  }
  0x3d   : > { %2647 = vsyncadd (%p46_p1), [#allocation6], 4294960128 }
  0x3e   : > { %2649 = dma.done.wait (%p46_p1), [#allocation9], 24704  }
  0x3f   : > { %2651 = vsyncadd (%p46_p1), [#allocation9], 4294942592 }
  0x40   : > { %2653 = dma.done.wait (%p46_p1), [#allocation12], 144  }
  0x41   : > { %2655 = vsyncadd (%p46_p1), [#allocation12], 4294967152  ;;  %v374_v0 = vld [vmem:[#allocation5 + $0x168] sm:$0xff]  ;;  %v373_v1 = vld [vmem:[#allocation5 + $0x150] sm:$0xff]  ;;  %vm440_vm3 = vcmask 523264   ;;  %v2687_v43 = vmov 64.0  }
  0x42   : > { %375 = vmatpush.msra.mxu0 %v374_v0  ;;  %2213 = vmatpush.msra.mxu2 %v374_v0  ;;  %v372_v2 = vld [vmem:[#allocation5 + $0x138] sm:$0xff]  ;;  %v371_v3 = vld [vmem:[#allocation5 + $0x120] sm:$0xff]  ;;  %v370_v4 = vld [vmem:[#allocation5 + $0x108] sm:$0xff]  ;;  %2366 = vrcp.f32 %v2687_v43  ;;  %s2688_s29 = smov 4   ;;  %s2689_s11 = smov 8  }
  0x43   : > { %v369_v5 = vld [vmem:[#allocation5 + $0xf0] sm:$0xff]  ;;  %v368_v6 = vld [vmem:[#allocation5 + $0xd8] sm:$0xff]  ;;  %v367_v7 = vld [vmem:[#allocation5 + $0xc0] sm:$0xff]  ;;  %s2690_s16 = smov 120   ;;  %s3342_s20 = scalar_lea.vmem [#allocation13], %s2173_s7 }
  0x44   : > { %376 = vmatpush.msra.mxu0 %v373_v1  ;;  %2214 = vmatpush.msra.mxu2 %v373_v1  ;;  %v366_v8 = vld [vmem:[#allocation5 + $0xa8] sm:$0xff]  ;;  %v365_v9 = vld [vmem:[#allocation5 + $0x90] sm:$0xff]  ;;  %v364_v10 = vld [vmem:[#allocation5 + $0x78] sm:$0xff]  ;;  %s2212_s18 = sshll.u32 %s2752_s28, 6  ;;  %s2037_s15 = sshll.u32 %s3342_s20, 4  ;;  %s2038_s15 = int_to_ptr.vmem [resolvable:$true] %s2037_s15 }
  0x45   : > { %v363_v11 = vld [vmem:[#allocation5 + $0x60] sm:$0xff]  ;;  %v362_v12 = vld [vmem:[#allocation5 + $0x48] sm:$0xff]  ;;  %v361_v13 = vld [vmem:[#allocation5 + $0x30] sm:$0xff]  ;;  %s2036_s14 = scalar_lea.hbm %s3438_s6, %s2212_s18  ;;  %s2025_s28 = scalar_lea.sflag [#allocation4], %s2850_s12 }
  0x46   : > { %377 = vmatpush.msra.mxu0 %v372_v2  ;;  %2215 = vmatpush.msra.mxu2 %v372_v2  ;;  %v360_v14 = vld [vmem:[#allocation5 + $0x18] sm:$0xff]  ;;  %v359_v15 = vld [vmem:[#allocation5] sm:$0xff]  ;;  %v352_v18 = vld [vmem:[%s2856_s13 + $0x8] sm:$0xff]  ;;  %s2039_s8 = sshll.u32 %s2036_s14, 4  ;;  %s2040_s8 = int_to_ptr.hbm [resolvable:$true] %s2039_s8 }
  0x47   : > { %v351_v16 = vld [vmem:[%s2856_s13] sm:$0xff]  ;;  %v356_v19 = vld [vmem:[%s2856_s13 + $0x28] sm:$0xff]  ;;  %v353_v20 = vld [vmem:[%s2856_s13 + $0x10] sm:$0xff]  ;;  %s2610_s17 = sshra.s32 %s2040_s8, 4  ;;  %s2611_s17 = int_to_ptr.hbm [resolvable:$true] %s2610_s17 }
  0x48   : > { %378 = vmatpush.msra.mxu0 %v371_v3  ;;  %2216 = vmatpush.msra.mxu2 %v371_v3  ;;  %v355_v17 = vld [vmem:[%s2856_s13 + $0x20] sm:$0xff]  ;;  %v357_v21 = vld [vmem:[%s2856_s13 + $0x30] sm:$0xff]  ;;  %v354_v22 = vld [vmem:[%s2856_s13 + $0x18] sm:$0xff]  ;;  %v2915_v60 = vpop.eup %2366  ;;  %s2612_s7 = scalar_lea.hbm %s2611_s17, 64  ;;  %p2617_p5 = scmp.lt.s32.totalorder %s2611_s17, %s3438_s6 }
  0x49   : > { %v358_v23 = vld [vmem:[%s2856_s13 + $0x38] sm:$0xff]  ;;  %vm467_vm9 = vweird.f32 %v2915_v60  ;;  %p2613_p1 = scmp.ne.s32.totalorder %s2611_s17, %s2612_s7 }
  0x4a   : > { %379 = vmatpush.msra.mxu0 %v370_v4  ;;  %2217 = vmatpush.msra.mxu2 %v370_v4 }
  0x4b   : > { %p2614_p3 = pnand %p2613_p1, %p2816_p12 }
  0x4c   : > { %380 = vmatpush.msra.mxu0 %v369_v5  ;;  %2218 = vmatpush.msra.mxu2 %v369_v5 }
  0x4d   : > { %p2615_p11 = pneg %p2614_p3 }
  0x4e   : > { %381 = vmatpush.msra.mxu0 %v368_v6  ;;  %2219 = vmatpush.msra.mxu2 %v368_v6 }
  0x50   : > { %382 = vmatpush.msra.mxu0 %v367_v7  ;;  %2220 = vmatpush.msra.mxu2 %v367_v7  ;;  %v536_v7 = vld [vmem:[#allocation7 + $0x38] sm:$0xff] }
  0x51   : > { %573 = vmatpush.msra.mxu1 %v536_v7  ;;  %2229 = vmatpush.msra.mxu3 %v536_v7 }
  0x52   : > { %383 = vmatpush.msra.mxu0 %v366_v8  ;;  %2221 = vmatpush.msra.mxu2 %v366_v8 }
  0x54   : > { %384 = vmatpush.msra.mxu0 %v365_v9  ;;  %2222 = vmatpush.msra.mxu2 %v365_v9 }
  0x56   : > { %385 = vmatpush.msra.mxu0 %v364_v10  ;;  %2223 = vmatpush.msra.mxu2 %v364_v10 }
  0x58   : > { %386 = vmatpush.msra.mxu0 %v363_v11  ;;  %2224 = vmatpush.msra.mxu2 %v363_v11  ;;  %v463_v11 = vmul.f32 64.0, %v2915_v60 }
  0x5a   : > { %387 = vmatpush.msra.mxu0 %v362_v12  ;;  %2225 = vmatpush.msra.mxu2 %v362_v12 }
  0x5c   : > { %388 = vmatpush.msra.mxu0 %v361_v13  ;;  %2226 = vmatpush.msra.mxu2 %v361_v13 }
  0x5e   : > { %389 = vmatpush.msra.mxu0 %v360_v14  ;;  %2227 = vmatpush.msra.mxu2 %v360_v14 }
  0x60   : > { %390 = vmatpush.msra.mxu0 %v359_v15  ;;  %2228 = vmatpush.msra.mxu2 %v359_v15  ;;  %v535_v15 = vld [vmem:[#allocation7 + $0x30] sm:$0xff] }
  0x61   : > { %391 = vmatmul.f32.vlgmr.msra.gmra.mxu0 %v351_v16  ;;  %403 = vmatmul.f32.vlgmr.msra.gmra.mxu2 %v355_v17 }
  0x62   : > { %574 = vmatpush.msra.mxu1 %v535_v15  ;;  %2230 = vmatpush.msra.mxu3 %v535_v15 }
  0x69   : > { %394 = vmatmul.f32.gmra.mxu0 %v352_v18  ;;  %406 = vmatmul.f32.gmra.mxu2 %v356_v19  ;;  %v534_v19 = vld [vmem:[#allocation7 + $0x28] sm:$0xff] }
  0x6a   : > { %575 = vmatpush.msra.mxu1 %v534_v19  ;;  %2231 = vmatpush.msra.mxu3 %v534_v19 }
  0x71   : > { %397 = vmatmul.f32.gmra.mxu0 %v353_v20  ;;  %409 = vmatmul.f32.gmra.mxu2 %v357_v21 }
  0x79   : > { %400 = vmatmul.f32.gmra.mxu0 %v354_v22  ;;  %412 = vmatmul.f32.gmra.mxu2 %v358_v23  ;;  %v533_v22 = vld [vmem:[#allocation7 + $0x20] sm:$0xff] }
  0x7a   : > { %576 = vmatpush.msra.mxu1 %v533_v22  ;;  %2232 = vmatpush.msra.mxu3 %v533_v22 }
  0xde   : > { %v392_v24 = vpop.f32.mrf.mxu0 }
  0xdf   : > { %v424_v29 = vmul.f32 0.01, %v392_v24  ;;  %vm416_vm1 = vcmp.gt.f32.partialorder %v392_v24, 0.0 }
  0xe1   : > { %v2884_v33 = vsel %vm416_vm1, %v392_v24, %v424_v29 }
  0xe2   : > { %v470_v37 = vmul.f32 %v2884_v33, %v2884_v33  ;;  %v441_v41 = vsel %vm440_vm3, %v2884_v33, 0.0 }
  0xe4   : > { %v404_v25 = vpop.f32.mrf.mxu2  ;;  %v478_v51 = vsel %vm440_vm3, %v470_v37, 0.0 }
  0xe5   : > { %v428_v35 = vmul.f32 0.01, %v404_v25  ;;  %vm420_vm4 = vcmp.gt.f32.partialorder %v404_v25, 0.0 }
  0xe6   : > { %v395_v26 = vpop.f32.mrf.mxu0 }
  0xe7   : > { %v425_v27 = vmul.f32 0.01, %v395_v26  ;;  %vm417_vm0 = vcmp.gt.f32.partialorder %v395_v26, 0.0  ;;  %v2898_v44 = vsel %vm420_vm4, %v404_v25, %v428_v35  ;;  %v464_v25 = vsub.f32 1.0, %v463_v11  ;;  %v531_v35 = vld [vmem:[#allocation7 + $0x10] sm:$0xff] }
  0xe8   : > { %v474_v57 = vmul.f32 %v2898_v44, %v2898_v44  ;;  %v448_v0 = vsel %vm440_vm3, %v2898_v44, 0.0 }
  0xe9   : > { %v2882_v31 = vsel %vm417_vm0, %v395_v26, %v425_v27 }
  0xea   : > { %v471_v36 = vmul.f32 %v2882_v31, %v2882_v31  ;;  %v442_v38 = vsel %vm440_vm3, %v2882_v31, 0.0  ;;  %v485_v8 = vsel %vm440_vm3, %v474_v57, 0.0 }
  0xeb   : > { %v443_v48 = vadd.f32 %v442_v38, %v441_v41 }
  0xec   : > { %v407_v28 = vpop.f32.mrf.mxu2  ;;  %v479_v45 = vsel %vm440_vm3, %v471_v36, 0.0  ;;  %v465_v36 = vmul.f32 %v2915_v60, %v464_v25 }
  0xed   : > { %v429_v42 = vmul.f32 0.01, %v407_v28  ;;  %vm421_vm5 = vcmp.gt.f32.partialorder %v407_v28, 0.0  ;;  %v480_v53 = vadd.f32 %v479_v45, %v478_v51 }
  0xee   : > { %v398_v30 = vpop.f32.mrf.mxu0  ;;  %v466_v43 = vadd.f32 %v2915_v60, %v465_v36  ;;  %v830_v36 = vld [vmem:[#allocation5 + $0x148] sm:$0xff] }
  0xef   : > { %vm418_vm2 = vcmp.gt.f32.partialorder %v398_v30, 0.0  ;;  %v426_v32 = vmul.f32 0.01, %v398_v30  ;;  %v2905_v54 = vsel %vm421_vm5, %v407_v28, %v429_v42  ;;  %v532_v28 = vld [vmem:[#allocation7 + $0x18] sm:$0xff]  ;;  %v529_v42 = vld [vmem:[#allocation7] sm:$0xff] }
  0xf0   : > { %v475_v1 = vmul.f32 %v2905_v54, %v2905_v54  ;;  %v450_v9 = vsel %vm440_vm3, %v2905_v54, 0.0  ;;  %577 = vmatpush.msra.mxu1 %v532_v28  ;;  %2233 = vmatpush.msra.mxu3 %v532_v28  ;;  %v831_v28 = vld [vmem:[#allocation5 + $0x160] sm:$0xff] }
  0xf1   : > { %v2886_v34 = vsel %vm418_vm2, %v398_v30, %v426_v32 }
  0xf2   : > { %v472_v39 = vmul.f32 %v2886_v34, %v2886_v34  ;;  %v444_v46 = vsel %vm440_vm3, %v2886_v34, 0.0  ;;  %v487_v16 = vsel %vm440_vm3, %v475_v1, 0.0  ;;  %578 = vmatpush.msra.mxu1 %v531_v35  ;;  %2234 = vmatpush.msra.mxu3 %v531_v35  ;;  %v708_v35 = vld [vmem:[#allocation5 + $0x140] sm:$0xff] }
  0xf3   : > { %v445_v55 = vadd.f32 %v444_v46, %v443_v48 }
  0xf4   : > { %v410_v40 = vpop.f32.mrf.mxu2  ;;  %v481_v52 = vsel %vm440_vm3, %v472_v39, 0.0  ;;  %v530_v39 = vld [vmem:[#allocation7 + $0x8] sm:$0xff] }
  0xf5   : > { %v430_v49 = vmul.f32 0.01, %v410_v40  ;;  %vm422_vm7 = vcmp.gt.f32.partialorder %v410_v40, 0.0  ;;  %v482_v61 = vadd.f32 %v481_v52, %v480_v53  ;;  %579 = vmatpush.msra.mxu1 %v530_v39  ;;  %2235 = vmatpush.msra.mxu3 %v530_v39 }
  0xf6   : > { %v401_v47 = vpop.f32.mrf.mxu0 }
  0xf7   : > { %vm419_vm6 = vcmp.gt.f32.partialorder %v401_v47, 0.0  ;;  %v427_v50 = vmul.f32 0.01, %v401_v47  ;;  %v2917_v62 = vsel %vm422_vm7, %v410_v40, %v430_v49  ;;  %580 = vmatpush.msra.mxu1 %v529_v42  ;;  %2236 = vmatpush.msra.mxu3 %v529_v42  ;;  %v2945_v49 = vsel %vm467_vm9, %v2915_v60, %v466_v43  ;;  %v707_v42 = vld [vmem:[#allocation5 + $0x128] sm:$0xff]  ;;  %v829_v43 = vld [vmem:[#allocation5 + $0x130] sm:$0xff] }
  0xf8   : > { %v476_v10 = vmul.f32 %v2917_v62, %v2917_v62  ;;  %v452_v17 = vsel %vm440_vm3, %v2917_v62, 0.0 }
  0xf9   : > { %v2907_v56 = vsel %vm419_vm6, %v401_v47, %v427_v50 }
  0xfa   : > { %v446_v58 = vsel %vm440_vm3, %v2907_v56, 0.0  ;;  %v473_v59 = vmul.f32 %v2907_v56, %v2907_v56  ;;  %v489_v23 = vsel %vm440_vm3, %v476_v10, 0.0 }
  0xfb   : > { %v447_v63 = vadd.f32 %v446_v58, %v445_v55 }
  0xfc   : > { %v483_v2 = vsel %vm440_vm3, %v473_v59, 0.0  ;;  %v413_v3 = vpop.f32.mrf.mxu2 }
  0xfd   : > { %v449_v4 = vadd.f32 %v448_v0, %v447_v63  ;;  %v484_v5 = vadd.f32 %v483_v2, %v482_v61  ;;  %vm423_vm8 = vcmp.gt.f32.partialorder %v413_v3, 0.0  ;;  %v431_v6 = vmul.f32 0.01, %v413_v3 }
  0xff   : > { %v486_v12 = vadd.f32 %v485_v8, %v484_v5  ;;  %v2930_v13 = vsel %vm423_vm8, %v413_v3, %v431_v6  ;;  %v451_v14 = vadd.f32 %v450_v9, %v449_v4 }
 0x100   : > { %v477_v18 = vmul.f32 %v2930_v13, %v2930_v13  ;;  %v454_v24 = vsel %vm440_vm3, %v2930_v13, 0.0 }
 0x101   : > { %v453_v20 = vadd.f32 %v452_v17, %v451_v14  ;;  %v488_v21 = vadd.f32 %v487_v16, %v486_v12 }
 0x102   : > { %v491_v29 = vsel %vm440_vm3, %v477_v18, 0.0 }
 0x103   : > { %v455_v26 = vadd.f32 %v454_v24, %v453_v20  ;;  %v490_v27 = vadd.f32 %v489_v23, %v488_v21  ;;  %v710_v23 = vld [vmem:[#allocation5 + $0x170] sm:$0xff]  ;;  %v832_v24 = vld [vmem:[#allocation5 + $0x178] sm:$0xff] }
 0x104   : > { %711 = vmatpush.msrb.mxu2 %v710_v23  ;;  %833 = vmatpush.msrb.mxu3 %v832_v24 }
 0x105   : > { %v456_v30 = vrot.slane %v455_v26, 4  ;;  %v492_v32 = vadd.f32 %v491_v29, %v490_v27  ;;  %v709_v27 = vld [vmem:[#allocation5 + $0x158] sm:$0xff] }
 0x106   : > { %712 = vmatpush.msrb.mxu2 %v709_v27  ;;  %834 = vmatpush.msrb.mxu3 %v831_v28  ;;  %v821_v27 = vld [vmem:[#allocation5 + $0x70] sm:$0xff] }
 0x107   : > { %v457_v37 = vadd.f32 %v456_v30, %v455_v26  ;;  %v493_v38 = vrot.slane %v492_v32, 4 }
 0x108   : > { %713 = vmatpush.msrb.mxu2 %v708_v35  ;;  %835 = vmatpush.msrb.mxu3 %v830_v36  ;;  %v820_v35 = vld [vmem:[#allocation5 + $0x58] sm:$0xff] }
 0x109   : > { %v458_v40 = vrot.slane %v457_v37, 2  ;;  %v494_v41 = vadd.f32 %v493_v38, %v492_v32 }
 0x10a   : > { %714 = vmatpush.msrb.mxu2 %v707_v42  ;;  %836 = vmatpush.msrb.mxu3 %v829_v43 }
 0x10b   : > { %v459_v45 = vadd.f32 %v458_v40, %v457_v37  ;;  %v495_v46 = vrot.slane %v494_v41, 2 }
 0x10d   : > { %v460_v47 = vrot.slane %v459_v45, 1  ;;  %v496_v48 = vadd.f32 %v495_v46, %v494_v41 }
 0x10f   : > { %v461_v50 = vadd.f32 %v460_v47, %v459_v45  ;;  %v497_v51 = vrot.slane %v496_v48, 1 }
 0x111   : > { %v469_v52 = vmul.f32 %v2945_v49, %v461_v50  ;;  %v498_v53 = vadd.f32 %v497_v51, %v496_v48 }
 0x113   : > { %v499_v55 = vmul.f32 %v498_v53, %v2945_v49  ;;  %v500_v57 = vmul.f32 %v469_v52, %v469_v52  ;;  %v502_v60 = vsub.f32 %v2884_v33, %v469_v52  ;;  %v506_v4 = vsub.f32 %v2898_v44, %v469_v52  ;;  %v828_v53 = vld [vmem:[#allocation5 + $0x118] sm:$0xff] }
 0x114   : > { %v503_v8 = vsub.f32 %v2882_v31, %v469_v52  ;;  %v507_v9 = vsub.f32 %v2905_v54, %v469_v52  ;;  %v504_v33 = vsub.f32 %v2886_v34, %v469_v52  ;;  %v508_v44 = vsub.f32 %v2917_v62, %v469_v52  ;;  %v2965_v62 = vld [vmem:[#allocation11] ss:$0 sm:$0xff]  ;;  %837 = vmatpush.msrb.mxu3 %v828_v53 }
 0x115   : > { %v501_v58 = vsub.f32 %v499_v55, %v500_v57  ;;  %v505_v31 = vsub.f32 %v2907_v56, %v469_v52  ;;  %v509_v54 = vsub.f32 %v2930_v13, %v469_v52  ;;  %v706_v52 = vld [vmem:[#allocation5 + $0x110] sm:$0xff] }
 0x116   : > { %715 = vmatpush.msrb.mxu2 %v706_v52 }
 0x117   : > { %v510_v59 = vadd.f32 1e-05, %v501_v58 }
 0x119   : > { %2368 = vrsqrt.f32 %v510_v59  ;;  %vm517_vm11 = vweird.f32 %v510_v59 }
 0x11f   : > { %v2369_v61 = vpop.eup %2368 }
 0x120   : > { %v512_v63 = vmul.f32 %v2369_v61, %v510_v59  ;;  %vm518_vm10 = vweird.f32 %v2369_v61 }
 0x121   : > { %vm519_vm12 = vmor %vm517_vm11, %vm518_vm10 }
 0x122   : > { %v513_v0 = vmul.f32 %v2369_v61, %v512_v63  ;;  %v827_v63 = vld [vmem:[#allocation5 + $0x100] sm:$0xff] }
 0x123   : > { %838 = vmatpush.msrb.mxu3 %v827_v63 }
 0x124   : > { %v514_v1 = vmul.f32 0.5, %v513_v0 }
 0x126   : > { %v515_v2 = vsub.f32 1.5, %v514_v1 }
 0x128   : > { %v516_v3 = vmul.f32 %v2369_v61, %v515_v2 }
 0x12a   : > { %v520_v5 = vsel %vm519_vm12, %v2369_v61, %v516_v3  ;;  %v705_v61 = vld [vmem:[#allocation5 + $0xf8] sm:$0xff] }
 0x12b   : > { %v521_v6 = vmul.f32 %v520_v5, %v502_v60  ;;  %v525_v7 = vmul.f32 %v520_v5, %v506_v4  ;;  %v522_v10 = vmul.f32 %v520_v5, %v503_v8  ;;  %v526_v11 = vmul.f32 %v520_v5, %v507_v9  ;;  %716 = vmatpush.msrb.mxu2 %v705_v61 }
 0x12c   : > { %v523_v12 = vmul.f32 %v520_v5, %v504_v33  ;;  %v527_v14 = vmul.f32 %v520_v5, %v508_v44  ;;  %v524_v15 = vmul.f32 %v520_v5, %v505_v31  ;;  %v528_v16 = vmul.f32 %v520_v5, %v509_v54  ;;  %v703_v44 = vld [vmem:[#allocation5 + $0xc8] sm:$0xff] }
 0x12d   : > { %2180 = vmatmul.msk.f32.vlgmr.msra.gmra.mxu1 %vm440_vm3, %v521_v6  ;;  %2184 = vmatmul.msk.f32.vlgmr.msra.gmra.mxu3 %vm440_vm3, %v525_v7  ;;  %v704_v6 = vld [vmem:[#allocation5 + $0xe0] sm:$0xff]  ;;  %v826_v7 = vld [vmem:[#allocation5 + $0xe8] sm:$0xff] }
 0x12e   : > { %717 = vmatpush.msrb.mxu2 %v704_v6  ;;  %839 = vmatpush.msrb.mxu3 %v826_v7 }
 0x130   : > { %718 = vmatpush.msrb.mxu2 %v703_v44 }
 0x135   : > { %2181 = vmatmul.msk.f32.gmra.mxu1 %vm440_vm3, %v522_v10  ;;  %2185 = vmatmul.msk.f32.gmra.mxu3 %vm440_vm3, %v526_v11 }
 0x13d   : > { %2182 = vmatmul.msk.f32.gmra.mxu1 %vm440_vm3, %v523_v12  ;;  %2186 = vmatmul.msk.f32.gmra.mxu3 %vm440_vm3, %v527_v14  ;;  %v825_v12 = vld [vmem:[#allocation5 + $0xd0] sm:$0xff] }
 0x13e   : > { %840 = vmatpush.msrb.mxu3 %v825_v12 }
 0x145   : > { %2183 = vmatmul.msk.f32.gmra.mxu1 %vm440_vm3, %v524_v15  ;;  %2187 = vmatmul.msk.f32.gmra.mxu3 %vm440_vm3, %v528_v16 }
 0x1aa   : > { %v582_v17 = vpop.f32.mrf.mxu1 }
 0x1ab   : > { %v583_v21 = vadd.f32 %v2965_v62, %v582_v17  ;;  %v702_v17 = vld [vmem:[#allocation5 + $0xb0] sm:$0xff] }
 0x1ac   : > { %719 = vmatpush.msrb.mxu2 %v702_v17 }
 0x1ad   : > { %v614_v25 = vmul.f32 0.01, %v583_v21  ;;  %vm606_vm14 = vcmp.gt.f32.partialorder %v583_v21, 0.0 }
 0x1af   : > { %v2973_v37 = vsel %vm606_vm14, %v583_v21, %v614_v25  ;;  %vm1221_vm14 = vcmask 1043456  }
 0x1b0   : > { %v594_v34 = vpop.f32.mrf.mxu3  ;;  %v644_v48 = vmul.f32 %v2973_v37, %v2973_v37 }
 0x1b1   : > { %v595_v29 = vadd.f32 %v2965_v62, %v594_v34  ;;  %v824_v34 = vld [vmem:[#allocation5 + $0xb8] sm:$0xff] }
 0x1b2   : > { %v585_v18 = vpop.f32.mrf.mxu1  ;;  %841 = vmatpush.msrb.mxu3 %v824_v34 }
 0x1b3   : > { %v586_v19 = vadd.f32 %v2965_v62, %v585_v18  ;;  %v618_v45 = vmul.f32 0.01, %v595_v29  ;;  %vm610_vm0 = vcmp.gt.f32.partialorder %v595_v29, 0.0 }
 0x1b5   : > { %v615_v56 = vmul.f32 0.01, %v586_v19  ;;  %vm607_vm13 = vcmp.gt.f32.partialorder %v586_v19, 0.0  ;;  %v2989_v0 = vsel %vm610_vm0, %v595_v29, %v618_v45  ;;  %v696_v45 = vld [vmem:[#allocation5 + $0x20] sm:$0xff] }
 0x1b6   : > { %v648_v10 = vmul.f32 %v2989_v0, %v2989_v0 }
 0x1b7   : > { %v2971_v30 = vsel %vm607_vm13, %v586_v19, %v615_v56  ;;  %v823_v19 = vld [vmem:[#allocation5 + $0xa0] sm:$0xff] }
 0x1b8   : > { %v597_v20 = vpop.f32.mrf.mxu3  ;;  %v645_v40 = vmul.f32 %v2971_v30, %v2971_v30  ;;  %v630_v50 = vadd.f32 %v2971_v30, %v2973_v37  ;;  %v700_v56 = vld [vmem:[#allocation5 + $0x80] sm:$0xff]  ;;  %842 = vmatpush.msrb.mxu3 %v823_v19 }
 0x1b9   : > { %v598_v38 = vadd.f32 %v2965_v62, %v597_v20 }
 0x1ba   : > { %v588_v22 = vpop.f32.mrf.mxu1  ;;  %v652_v58 = vadd.f32 %v645_v40, %v644_v48  ;;  %v697_v40 = vld [vmem:[#allocation5 + $0x38] sm:$0xff] }
 0x1bb   : > { %v589_v13 = vadd.f32 %v2965_v62, %v588_v22  ;;  %v619_v55 = vmul.f32 0.01, %v598_v38  ;;  %vm611_vm2 = vcmp.gt.f32.partialorder %v598_v38, 0.0 }
 0x1bd   : > { %v616_v26 = vmul.f32 0.01, %v589_v13  ;;  %vm608_vm15 = vcmp.gt.f32.partialorder %v589_v13, 0.0  ;;  %v2997_v8 = vsel %vm611_vm2, %v598_v38, %v619_v55 }
 0x1be   : > { %v649_v54 = vmul.f32 %v2997_v8, %v2997_v8 }
 0x1bf   : > { %v2976_v39 = vsel %vm608_vm15, %v589_v13, %v616_v26  ;;  %v822_v13 = vld [vmem:[#allocation5 + $0x88] sm:$0xff]  ;;  %vm1204_vm15 = vcmask 31744  }
 0x1c0   : > { %v600_v32 = vpop.f32.mrf.mxu3  ;;  %v646_v51 = vmul.f32 %v2976_v39, %v2976_v39  ;;  %v631_v59 = vadd.f32 %v630_v50, %v2976_v39  ;;  %v699_v26 = vld [vmem:[#allocation5 + $0x68] sm:$0xff]  ;;  %843 = vmatpush.msrb.mxu3 %v822_v13 }
 0x1c1   : > { %v601_v46 = vadd.f32 %v2965_v62, %v600_v32  ;;  %v698_v32 = vld [vmem:[#allocation5 + $0x50] sm:$0xff]  ;;  %v695_v50 = vld [vmem:[#allocation5 + $0x8] sm:$0xff] }
 0x1c2   : > { %v591_v41 = vpop.f32.mrf.mxu1  ;;  %v653_v3 = vadd.f32 %v652_v58, %v646_v51  ;;  %844 = vmatpush.msrb.mxu3 %v821_v27  ;;  %v817_v51 = vld [vmem:[#allocation5 + $0x10] sm:$0xff]  ;;  %v953_v27 = vld [vmem:[#allocation8 + $0x2c0] sm:$0xff] }
 0x1c3   : > { %v592_v47 = vadd.f32 %v2965_v62, %v591_v41  ;;  %v620_v1 = vmul.f32 0.01, %v601_v46  ;;  %vm612_vm3 = vcmp.gt.f32.partialorder %v601_v46, 0.0  ;;  %v819_v41 = vld [vmem:[#allocation5 + $0x40] sm:$0xff] }
 0x1c4   : > { %845 = vmatpush.msrb.mxu3 %v820_v35  ;;  %v968_v35 = vld [vmem:[#allocation8 + $0x590] sm:$0xff] }
 0x1c5   : > { %vm609_vm1 = vcmp.gt.f32.partialorder %v592_v47, 0.0  ;;  %v617_v57 = vmul.f32 0.01, %v592_v47  ;;  %v3003_v14 = vsel %vm612_vm3, %v601_v46, %v620_v1  ;;  %v818_v46 = vld [vmem:[#allocation5 + $0x28] sm:$0xff] }
 0x1c6   : > { %v650_v20 = vmul.f32 %v3003_v14, %v3003_v14  ;;  %846 = vmatpush.msrb.mxu3 %v819_v41 }
 0x1c7   : > { %v2991_v2 = vsel %vm609_vm1, %v592_v47, %v617_v57 }
 0x1c8   : > { %v632_v60 = vadd.f32 %v631_v59, %v2991_v2  ;;  %v647_v4 = vmul.f32 %v2991_v2, %v2991_v2  ;;  %v603_v5 = vpop.f32.mrf.mxu3  ;;  %847 = vmatpush.msrb.mxu3 %v818_v46 }
 0x1c9   : > { %v604_v9 = vadd.f32 %v2965_v62, %v603_v5  ;;  %v701_v62 = vld [vmem:[#allocation5 + $0x98] sm:$0xff] }
 0x1ca   : > { %v633_v11 = vadd.f32 %v632_v60, %v2989_v0  ;;  %v654_v33 = vadd.f32 %v653_v3, %v647_v4  ;;  %720 = vmatpush.msrb.mxu2 %v701_v62  ;;  %848 = vmatpush.msrb.mxu3 %v817_v51 }
 0x1cb   : > { %vm613_vm4 = vcmp.gt.f32.partialorder %v604_v9, 0.0  ;;  %v621_v31 = vmul.f32 0.01, %v604_v9 }
 0x1cc   : > { %v655_v15 = vadd.f32 %v654_v33, %v648_v10  ;;  %v634_v16 = vadd.f32 %v633_v11, %v2997_v8  ;;  %721 = vmatpush.msrb.mxu2 %v700_v56 }
 0x1cd   : > { %v3008_v18 = vsel %vm613_vm4, %v604_v9, %v621_v31 }
 0x1ce   : > { %v635_v21 = vadd.f32 %v634_v16, %v3003_v14  ;;  %v656_v22 = vadd.f32 %v655_v15, %v649_v54  ;;  %v651_v24 = vmul.f32 %v3008_v18, %v3008_v18  ;;  %722 = vmatpush.msrb.mxu2 %v699_v26  ;;  %v969_v26 = vld [vmem:[#allocation8 + $0x5c0] sm:$0xff] }
 0x1d0   : > { %v636_v23 = vadd.f32 %v635_v21, %v3008_v18  ;;  %v657_v25 = vadd.f32 %v656_v22, %v650_v20  ;;  %723 = vmatpush.msrb.mxu2 %v698_v32 }
 0x1d2   : > { %v637_v28 = vrot.slane %v636_v23, 4  ;;  %v658_v29 = vadd.f32 %v657_v25, %v651_v24  ;;  %724 = vmatpush.msrb.mxu2 %v697_v40  ;;  %v970_v24 = vld [vmem:[#allocation8 + $0x5f0] sm:$0xff] }
 0x1d3   : > { %v954_v25 = vld [vmem:[#allocation8 + $0x2f0] sm:$0xff]  ;;  %971 = vmatpush.msrb.mxu1 %v970_v24 }
 0x1d4   : > { %v638_v36 = vadd.f32 %v637_v28, %v636_v23  ;;  %v659_v38 = vrot.slane %v658_v29, 4  ;;  %725 = vmatpush.msrb.mxu2 %v696_v45  ;;  %1012 = vmatpush.msrb.mxu0 %v954_v25  ;;  %v946_v24 = vld [vmem:[#allocation8 + $0x170] sm:$0xff] }
 0x1d5   : > { %972 = vmatpush.msrb.mxu1 %v969_v26 }
 0x1d6   : > { %v639_v42 = vrot.slane %v638_v36, 2  ;;  %v660_v43 = vadd.f32 %v659_v38, %v658_v29  ;;  %726 = vmatpush.msrb.mxu2 %v695_v50  ;;  %1013 = vmatpush.msrb.mxu0 %v953_v27 }
 0x1d7   : > { %973 = vmatpush.msrb.mxu1 %v968_v35  ;;  %v961_v35 = vld [vmem:[#allocation8 + $0x440] sm:$0xff] }
 0x1d8   : > { %v640_v47 = vadd.f32 %v639_v42, %v638_v36  ;;  %v661_v48 = vrot.slane %v660_v43, 2  ;;  %v952_v36 = vld [vmem:[#allocation8 + $0x290] sm:$0xff]  ;;  %v967_v42 = vld [vmem:[#allocation8 + $0x560] sm:$0xff] }
 0x1d9   : > { %1014 = vmatpush.msrb.mxu0 %v952_v36  ;;  %974 = vmatpush.msrb.mxu1 %v967_v42  ;;  %v945_v36 = vld [vmem:[#allocation8 + $0x140] sm:$0xff] }
 0x1da   : > { %v641_v52 = vrot.slane %v640_v47, 1  ;;  %v662_v53 = vadd.f32 %v661_v48, %v660_v43  ;;  %v951_v43 = vld [vmem:[#allocation8 + $0x260] sm:$0xff] }
 0x1db   : > { %1015 = vmatpush.msrb.mxu0 %v951_v43 }
 0x1dc   : > { %v642_v55 = vadd.f32 %v641_v52, %v640_v47  ;;  %v663_v57 = vrot.slane %v662_v53, 1  ;;  %v966_v52 = vld [vmem:[#allocation8 + $0x530] sm:$0xff] }
 0x1dd   : > { %975 = vmatpush.msrb.mxu1 %v966_v52 }
 0x1de   : > { %v643_v58 = vmul.f32 %v642_v55, %v2945_v49  ;;  %v664_v59 = vadd.f32 %v663_v57, %v662_v53  ;;  %v950_v53 = vld [vmem:[#allocation8 + $0x230] sm:$0xff] }
 0x1df   : > { %1016 = vmatpush.msrb.mxu0 %v950_v53 }
 0x1e0   : > { %v665_v61 = vmul.f32 %v664_v59, %v2945_v49  ;;  %v666_v63 = vmul.f32 %v643_v58, %v643_v58  ;;  %v674_v3 = vsub.f32 %v3003_v14, %v643_v58  ;;  %v675_v60 = vsub.f32 %v3008_v18, %v643_v58 }
 0x1e1   : > { %v668_v33 = vsub.f32 %v2973_v37, %v643_v58  ;;  %v669_v14 = vsub.f32 %v2971_v30, %v643_v58  ;;  %v670_v54 = vsub.f32 %v2976_v39, %v643_v58  ;;  %v671_v16 = vsub.f32 %v2991_v2, %v643_v58 }
 0x1e2   : > { %v667_v1 = vsub.f32 %v665_v61, %v666_v63  ;;  %v672_v37 = vsub.f32 %v2989_v0, %v643_v58  ;;  %v673_v30 = vsub.f32 %v2997_v8, %v643_v58 }
 0x1e4   : > { %v676_v4 = vadd.f32 1e-05, %v667_v1  ;;  %v965_v1 = vld [vmem:[#allocation8 + $0x500] sm:$0xff] }
 0x1e5   : > { %976 = vmatpush.msrb.mxu1 %v965_v1 }
 0x1e6   : > { %2370 = vrsqrt.f32 %v676_v4  ;;  %vm683_vm6 = vweird.f32 %v676_v4 }
 0x1ec   : > { %v2371_v5 = vpop.eup %2370 }
 0x1ed   : > { %v678_v6 = vmul.f32 %v2371_v5, %v676_v4  ;;  %vm684_vm5 = vweird.f32 %v2371_v5 }
 0x1ee   : > { %vm685_vm7 = vmor %vm683_vm6, %vm684_vm5 }
 0x1ef   : > { %v679_v7 = vmul.f32 %v2371_v5, %v678_v6 }
 0x1f1   : > { %v680_v9 = vmul.f32 0.5, %v679_v7 }
 0x1f3   : > { %v681_v10 = vsub.f32 1.5, %v680_v9 }
 0x1f5   : > { %v682_v11 = vmul.f32 %v2371_v5, %v681_v10 }
 0x1f7   : > { %v686_v44 = vsel %vm685_vm7, %v2371_v5, %v682_v11  ;;  %v964_v11 = vld [vmem:[#allocation8 + $0x4d0] sm:$0xff] }
 0x1f8   : > { %v687_v12 = vmul.f32 %v686_v44, %v668_v33  ;;  %v688_v31 = vmul.f32 %v686_v44, %v669_v14  ;;  %v689_v15 = vmul.f32 %v686_v44, %v670_v54  ;;  %v690_v17 = vmul.f32 %v686_v44, %v671_v16  ;;  %v948_v33 = vld [vmem:[#allocation8 + $0x1d0] sm:$0xff]  ;;  %977 = vmatpush.msrb.mxu1 %v964_v11  ;;  %v963_v16 = vld [vmem:[#allocation8 + $0x4a0] sm:$0xff] }
 0x1f9   : > { %v691_v34 = vmul.f32 %v686_v44, %v672_v37  ;;  %v692_v18 = vmul.f32 %v686_v44, %v673_v30  ;;  %v693_v62 = vmul.f32 %v686_v44, %v674_v3  ;;  %v694_v39 = vmul.f32 %v686_v44, %v675_v60  ;;  %v949_v3 = vld [vmem:[#allocation8 + $0x200] sm:$0xff] }
 0x1fa   : > { %727 = vmatmul.f32.vlgmr.msrb.gmra.mxu2 %v687_v12  ;;  %849 = vmatmul.f32.vlgmr.msrb.gmra.mxu3 %v687_v12 }
 0x1fb   : > { %1017 = vmatpush.msrb.mxu0 %v949_v3  ;;  %978 = vmatpush.msrb.mxu1 %v963_v16  ;;  %v958_v3 = vld [vmem:[#allocation8 + $0x3b0] sm:$0xff]  ;;  %v955_v16 = vld [vmem:[#allocation8 + $0x320] sm:$0xff] }
 0x1fd   : > { %1018 = vmatpush.msrb.mxu0 %v948_v33 }
 0x202   : > { %730 = vmatmul.f32.gmra.mxu2 %v688_v31  ;;  %852 = vmatmul.f32.gmra.mxu3 %v688_v31 }
 0x20a   : > { %733 = vmatmul.f32.gmra.mxu2 %v689_v15  ;;  %855 = vmatmul.f32.gmra.mxu3 %v689_v15 }
 0x212   : > { %736 = vmatmul.f32.gmra.mxu2 %v690_v17  ;;  %858 = vmatmul.f32.gmra.mxu3 %v690_v17  ;;  %v947_v17 = vld [vmem:[#allocation8 + $0x1a0] sm:$0xff] }
 0x213   : > { %1019 = vmatpush.msrb.mxu0 %v947_v17  ;;  %v939_v17 = vld [vmem:[#allocation8 + $0x20] sm:$0xff] }
 0x215   : > { %1020 = vmatpush.msrb.mxu0 %v946_v24 }
 0x217   : > { %1021 = vmatpush.msrb.mxu0 %v945_v36 }
 0x21a   : > { %739 = vmatmul.f32.gmra.mxu2 %v691_v34  ;;  %861 = vmatmul.f32.gmra.mxu3 %v691_v34 }
 0x222   : > { %742 = vmatmul.f32.gmra.mxu2 %v692_v18  ;;  %864 = vmatmul.f32.gmra.mxu3 %v692_v18 }
 0x22a   : > { %745 = vmatmul.f32.gmra.mxu2 %v693_v62  ;;  %867 = vmatmul.f32.gmra.mxu3 %v693_v62 }
 0x232   : > { %748 = vmatmul.f32.gmra.mxu2 %v694_v39  ;;  %870 = vmatmul.f32.gmra.mxu3 %v694_v39  ;;  %v962_v39 = vld [vmem:[#allocation8 + $0x470] sm:$0xff] }
 0x233   : > { %979 = vmatpush.msrb.mxu1 %v962_v39 }
 0x235   : > { %980 = vmatpush.msrb.mxu1 %v961_v35 }
 0x27d   : > { %v3026_v2 = vpop.f32.mrf.mxu2  ;;  %v3028_v19 = vpop.f32.mrf.mxu3 }
 0x27e   : > { %v766_v40 = vmul.f32 %v3026_v2, %v3026_v2  ;;  %v888_v45 = vmul.f32 %v3028_v19, %v3028_v19 }
 0x285   : > { %v3030_v20 = vpop.f32.mrf.mxu2  ;;  %v3032_v0 = vpop.f32.mrf.mxu3 }
 0x286   : > { %v767_v32 = vmul.f32 %v3030_v20, %v3030_v20  ;;  %v889_v38 = vmul.f32 %v3032_v0, %v3032_v0  ;;  %v752_v47 = vadd.f32 %v3030_v20, %v3026_v2  ;;  %v874_v50 = vadd.f32 %v3032_v0, %v3028_v19 }
 0x288   : > { %v774_v48 = vadd.f32 %v767_v32, %v766_v40  ;;  %v896_v55 = vadd.f32 %v889_v38, %v888_v45 }
 0x28d   : > { %v3034_v21 = vpop.f32.mrf.mxu2  ;;  %v3036_v8 = vpop.f32.mrf.mxu3 }
 0x28e   : > { %v768_v41 = vmul.f32 %v3034_v21, %v3034_v21  ;;  %v890_v46 = vmul.f32 %v3036_v8, %v3036_v8  ;;  %v753_v58 = vadd.f32 %v752_v47, %v3034_v21  ;;  %v875_v61 = vadd.f32 %v874_v50, %v3036_v8  ;;  %v944_v50 = vld [vmem:[#allocation8 + $0x110] sm:$0xff] }
 0x28f   : > { %1022 = vmatpush.msrb.mxu0 %v944_v50 }
 0x290   : > { %v775_v59 = vadd.f32 %v774_v48, %v768_v41  ;;  %v897_v60 = vadd.f32 %v896_v55, %v890_v46  ;;  %v960_v48 = vld [vmem:[#allocation8 + $0x410] sm:$0xff] }
 0x291   : > { %981 = vmatpush.msrb.mxu1 %v960_v48 }
 0x295   : > { %v3038_v22 = vpop.f32.mrf.mxu2  ;;  %v3040_v56 = vpop.f32.mrf.mxu3 }
 0x296   : > { %v769_v51 = vmul.f32 %v3038_v22, %v3038_v22  ;;  %v891_v57 = vmul.f32 %v3040_v56, %v3040_v56  ;;  %v754_v7 = vadd.f32 %v753_v58, %v3038_v22  ;;  %v876_v10 = vadd.f32 %v875_v61, %v3040_v56  ;;  %v943_v58 = vld [vmem:[#allocation8 + $0xe0] sm:$0xff] }
 0x297   : > { %1023 = vmatpush.msrb.mxu0 %v943_v58 }
 0x298   : > { %v776_v9 = vadd.f32 %v775_v59, %v769_v51  ;;  %v898_v44 = vadd.f32 %v897_v60, %v891_v57  ;;  %v959_v57 = vld [vmem:[#allocation8 + $0x3e0] sm:$0xff]  ;;  %v942_v60 = vld [vmem:[#allocation8 + $0xb0] sm:$0xff] }
 0x299   : > { %982 = vmatpush.msrb.mxu1 %v959_v57  ;;  %1024 = vmatpush.msrb.mxu0 %v942_v60 }
 0x29b   : > { %983 = vmatpush.msrb.mxu1 %v958_v3 }
 0x29d   : > { %v3042_v13 = vpop.f32.mrf.mxu2  ;;  %v3044_v23 = vpop.f32.mrf.mxu3 }
 0x29e   : > { %v770_v63 = vmul.f32 %v3042_v13, %v3042_v13  ;;  %v892_v4 = vmul.f32 %v3044_v23, %v3044_v23  ;;  %v755_v31 = vadd.f32 %v754_v7, %v3042_v13  ;;  %v877_v15 = vadd.f32 %v876_v10, %v3044_v23  ;;  %v941_v7 = vld [vmem:[#allocation8 + $0x80] sm:$0xff] }
 0x29f   : > { %1025 = vmatpush.msrb.mxu0 %v941_v7 }
 0x2a0   : > { %v777_v54 = vadd.f32 %v776_v9, %v770_v63  ;;  %v899_v37 = vadd.f32 %v898_v44, %v892_v4  ;;  %v957_v4 = vld [vmem:[#allocation8 + $0x380] sm:$0xff]  ;;  %v956_v44 = vld [vmem:[#allocation8 + $0x350] sm:$0xff] }
 0x2a1   : > { %984 = vmatpush.msrb.mxu1 %v957_v4 }
 0x2a3   : > { %985 = vmatpush.msrb.mxu1 %v956_v44 }
 0x2a5   : > { %v3046_v28 = vpop.f32.mrf.mxu2  ;;  %v3048_v29 = vpop.f32.mrf.mxu3  ;;  %986 = vmatpush.msrb.mxu1 %v955_v16 }
 0x2a6   : > { %v771_v12 = vmul.f32 %v3046_v28, %v3046_v28  ;;  %v893_v14 = vmul.f32 %v3048_v29, %v3048_v29  ;;  %v756_v18 = vadd.f32 %v755_v31, %v3046_v28  ;;  %v878_v62 = vadd.f32 %v877_v15, %v3048_v29 }
 0x2a8   : > { %v778_v25 = vadd.f32 %v777_v54, %v771_v12  ;;  %v900_v26 = vadd.f32 %v899_v37, %v893_v14  ;;  %v940_v12 = vld [vmem:[#allocation8 + $0x50] sm:$0xff] }
 0x2a9   : > { %1026 = vmatpush.msrb.mxu0 %v940_v12 }
 0x2ab   : > { %1027 = vmatpush.msrb.mxu0 %v939_v17 }
 0x2ad   : > { %v3076_v5 = vpop.f32.mrf.mxu2  ;;  %v3078_v6 = vpop.f32.mrf.mxu3 }
 0x2ae   : > { %v772_v34 = vmul.f32 %v3076_v5, %v3076_v5  ;;  %v894_v30 = vmul.f32 %v3078_v6, %v3078_v6  ;;  %v879_v27 = vadd.f32 %v878_v62, %v3078_v6  ;;  %v757_v32 = vadd.f32 %v756_v18, %v3076_v5 }
 0x2b0   : > { %v901_v38 = vadd.f32 %v900_v26, %v894_v30  ;;  %v779_v41 = vadd.f32 %v778_v25, %v772_v34 }
 0x2b5   : > { %v3096_v40 = vpop.f32.mrf.mxu2  ;;  %v3098_v42 = vpop.f32.mrf.mxu3 }
 0x2b6   : > { %v758_v43 = vadd.f32 %v757_v32, %v3096_v40  ;;  %v773_v45 = vmul.f32 %v3096_v40, %v3096_v40  ;;  %v880_v46 = vadd.f32 %v879_v27, %v3098_v42  ;;  %v895_v47 = vmul.f32 %v3098_v42, %v3098_v42 }
 0x2b8   : > { %v759_v51 = vrot.slane %v758_v43, 4  ;;  %v780_v52 = vadd.f32 %v779_v41, %v773_v45  ;;  %v881_v53 = vrot.slane %v880_v46, 4  ;;  %v902_v55 = vadd.f32 %v901_v38, %v895_v47 }
 0x2ba   : > { %v760_v59 = vadd.f32 %v759_v51, %v758_v43  ;;  %v781_v61 = vrot.slane %v780_v52, 4  ;;  %v882_v63 = vadd.f32 %v881_v53, %v880_v46  ;;  %v903_v1 = vrot.slane %v902_v55, 4 }
 0x2bc   : > { %v761_v9 = vrot.slane %v760_v59, 2  ;;  %v782_v10 = vadd.f32 %v781_v61, %v780_v52  ;;  %v883_v11 = vrot.slane %v882_v63, 2  ;;  %v904_v33 = vadd.f32 %v903_v1, %v902_v55 }
 0x2be   : > { %v762_v14 = vadd.f32 %v761_v9, %v760_v59  ;;  %v783_v31 = vrot.slane %v782_v10, 2  ;;  %v884_v54 = vadd.f32 %v883_v11, %v882_v63  ;;  %v905_v15 = vrot.slane %v904_v33, 2 }
 0x2c0   : > { %v763_v37 = vrot.slane %v762_v14, 1  ;;  %v784_v34 = vadd.f32 %v783_v31, %v782_v10  ;;  %v885_v30 = vrot.slane %v884_v54, 1  ;;  %v906_v18 = vadd.f32 %v905_v15, %v904_v33 }
 0x2c2   : > { %v764_v62 = vadd.f32 %v763_v37, %v762_v14  ;;  %v785_v39 = vrot.slane %v784_v34, 1  ;;  %v886_v24 = vadd.f32 %v885_v30, %v884_v54  ;;  %v907_v25 = vrot.slane %v906_v18, 1 }
 0x2c4   : > { %v3107_v26 = vmul.f32 %v764_v62, %v2945_v49  ;;  %v786_v27 = vadd.f32 %v785_v39, %v784_v34  ;;  %v3110_v32 = vmul.f32 %v886_v24, %v2945_v49  ;;  %v908_v35 = vadd.f32 %v907_v25, %v906_v18  ;;  %v3150_v25 = vld [vmem:[#allocation11 + $0x1] ss:$0 sm:$0xff] }
 0x2c6   : > { %v787_v36 = vmul.f32 %v786_v27, %v2945_v49  ;;  %v788_v38 = vmul.f32 %v3107_v26, %v3107_v26  ;;  %v909_v41 = vmul.f32 %v908_v35, %v2945_v49  ;;  %v910_v43 = vmul.f32 %v3110_v32, %v3110_v32 }
 0x2c7   : > { %v790_v3 = vsub.f32 %v3026_v2, %v3107_v26  ;;  %v912_v60 = vsub.f32 %v3028_v19, %v3110_v32  ;;  %v791_v11 = vsub.f32 %v3030_v20, %v3107_v26  ;;  %v913_v33 = vsub.f32 %v3032_v0, %v3110_v32 }
 0x2c8   : > { %v789_v45 = vsub.f32 %v787_v36, %v788_v38  ;;  %v911_v46 = vsub.f32 %v909_v41, %v910_v43  ;;  %v792_v2 = vsub.f32 %v3034_v21, %v3107_v26  ;;  %v914_v19 = vsub.f32 %v3036_v8, %v3110_v32 }
 0x2c9   : > { %v793_v20 = vsub.f32 %v3038_v22, %v3107_v26  ;;  %v915_v0 = vsub.f32 %v3040_v56, %v3110_v32  ;;  %v794_v21 = vsub.f32 %v3042_v13, %v3107_v26  ;;  %v916_v8 = vsub.f32 %v3044_v23, %v3110_v32 }
 0x2ca   : > { %v798_v47 = vadd.f32 1e-05, %v789_v45  ;;  %v920_v48 = vadd.f32 1e-05, %v911_v46  ;;  %v795_v22 = vsub.f32 %v3046_v28, %v3107_v26  ;;  %v917_v56 = vsub.f32 %v3048_v29, %v3110_v32 }
 0x2cb   : > { %v796_v13 = vsub.f32 %v3076_v5, %v3107_v26  ;;  %v918_v23 = vsub.f32 %v3078_v6, %v3110_v32  ;;  %v797_v28 = vsub.f32 %v3096_v40, %v3107_v26  ;;  %v919_v29 = vsub.f32 %v3098_v42, %v3110_v32 }
 0x2cc   : > { %2372 = vrsqrt.f32 %v798_v47  ;;  %vm805_vm10 = vweird.f32 %v798_v47  ;;  %vm927_vm12 = vweird.f32 %v920_v48 }
 0x2cd   : > { %2374 = vrsqrt.f32 %v920_v48 }
 0x2d2   : > { %v2373_v50 = vpop.eup %2372 }
 0x2d3   : > { %v2375_v51 = vpop.eup %2374  ;;  %v800_v52 = vmul.f32 %v2373_v50, %v798_v47  ;;  %vm806_vm8 = vweird.f32 %v2373_v50 }
 0x2d4   : > { %v922_v53 = vmul.f32 %v2375_v51, %v920_v48  ;;  %vm928_vm9 = vweird.f32 %v2375_v51  ;;  %vm807_vm11 = vmor %vm805_vm10, %vm806_vm8 }
 0x2d5   : > { %v801_v55 = vmul.f32 %v2373_v50, %v800_v52  ;;  %vm929_vm13 = vmor %vm927_vm12, %vm928_vm9 }
 0x2d6   : > { %v923_v57 = vmul.f32 %v2375_v51, %v922_v53 }
 0x2d7   : > { %v802_v58 = vmul.f32 0.5, %v801_v55 }
 0x2d8   : > { %v924_v59 = vmul.f32 0.5, %v923_v57 }
 0x2d9   : > { %v803_v61 = vsub.f32 1.5, %v802_v58 }
 0x2da   : > { %v925_v49 = vsub.f32 1.5, %v924_v59 }
 0x2db   : > { %v804_v63 = vmul.f32 %v2373_v50, %v803_v61 }
 0x2dc   : > { %v926_v1 = vmul.f32 %v2375_v51, %v925_v49 }
 0x2dd   : > { %v808_v4 = vsel %vm807_vm11, %v2373_v50, %v804_v63 }
 0x2de   : > { %v930_v7 = vsel %vm929_vm13, %v2375_v51, %v926_v1  ;;  %v809_v9 = vmul.f32 %v808_v4, %v790_v3  ;;  %v810_v44 = vmul.f32 %v808_v4, %v791_v11  ;;  %v811_v14 = vmul.f32 %v808_v4, %v792_v2 }
 0x2df   : > { %v931_v10 = vmul.f32 %v930_v7, %v912_v60  ;;  %v932_v12 = vmul.f32 %v930_v7, %v913_v33  ;;  %v933_v31 = vmul.f32 %v930_v7, %v914_v19  ;;  %v812_v54 = vmul.f32 %v808_v4, %v793_v20 }
 0x2e0   : > { %1028 = vmatmul.f32.vlgmr.msrb.gmra.mxu0 %v809_v9  ;;  %v934_v15 = vmul.f32 %v930_v7, %v915_v0  ;;  %v813_v16 = vmul.f32 %v808_v4, %v794_v21  ;;  %v935_v17 = vmul.f32 %v930_v7, %v916_v8  ;;  %v814_v37 = vmul.f32 %v808_v4, %v795_v22 }
 0x2e1   : > { %987 = vmatmul.f32.vlgmr.msrb.gmra.mxu1 %v931_v10  ;;  %v936_v34 = vmul.f32 %v930_v7, %v917_v56  ;;  %v815_v30 = vmul.f32 %v808_v4, %v796_v13  ;;  %v937_v18 = vmul.f32 %v930_v7, %v918_v23  ;;  %v816_v62 = vmul.f32 %v808_v4, %v797_v28 }
 0x2e2   : > { %v938_v39 = vmul.f32 %v930_v7, %v919_v29 }
 0x2e8   : > { %1031 = vmatmul.f32.gmra.mxu0 %v810_v44 }
 0x2e9   : > { %990 = vmatmul.f32.gmra.mxu1 %v932_v12 }
 0x2f0   : > { %1034 = vmatmul.f32.gmra.mxu0 %v811_v14 }
 0x2f1   : > { %993 = vmatmul.f32.gmra.mxu1 %v933_v31 }
 0x2f8   : > { %1037 = vmatmul.f32.gmra.mxu0 %v812_v54 }
 0x2f9   : > { %996 = vmatmul.f32.gmra.mxu1 %v934_v15 }
 0x300   : > { %1040 = vmatmul.f32.gmra.mxu0 %v813_v16 }
 0x301   : > { %999 = vmatmul.f32.gmra.mxu1 %v935_v17 }
 0x308   : > { %1043 = vmatmul.f32.gmra.mxu0 %v814_v37 }
 0x309   : > { %1002 = vmatmul.f32.gmra.mxu1 %v936_v34 }
 0x310   : > { %1046 = vmatmul.f32.gmra.mxu0 %v815_v30 }
 0x311   : > { %1005 = vmatmul.f32.gmra.mxu1 %v937_v18 }
 0x318   : > { %1049 = vmatmul.f32.gmra.mxu0 %v816_v62 }
 0x319   : > { %1008 = vmatmul.f32.gmra.mxu1 %v938_v39 }
 0x35d   : > { %v1029_v24 = vpop.f32.mrf.mxu0 }
 0x35e   : > { %v988_v5 = vpop.f32.mrf.mxu1 }
 0x35f   : > { %v1030_v27 = vadd.f32 %v1029_v24, %v988_v5  ;;  %v1169_v24 = vld [vmem:[#allocation10] sm:$0xff]  ;;  %v2408_v5 = vld [vmem:[%s2856_s13 + $0x38] sm:$0xff] }
 0x360   : > { %1201 = vst [vmem:[#allocation1] ss:$2 sm:$0xff] %v1169_v24  ;;  %v1409_v24 = vld [vmem:[#allocation8 + $0x4e8] sm:$0xff] }
 0x361   : > { %v1057_v6 = vadd.f32 %v3150_v25, %v1030_v27 }
 0x363   : > { %v1065_v35 = vmul.f32 0.5, %v1057_v6 }
 0x365   : > { %v1073_v36 = vmul.f32 1.442695, %v1065_v35  ;;  %v1032_v38 = vpop.f32.mrf.mxu0 }
 0x366   : > { %v991_v41 = vpop.f32.mrf.mxu1 }
 0x367   : > { %v1033_v43 = vadd.f32 %v1032_v38, %v991_v41  ;;  %2376 = vpow2.f32 %v1073_v36  ;;  %v1202_v36 = vld.sshfl [vmem:[#allocation1] sm:$0xff pattern:$0x75316420]  ;;  %v2409_v41 = vld [vmem:[%s2856_s13] sm:$0xff] }
 0x368   : > { %2237 = vmatpush.msk.msra.mxu3 %vm1221_vm14, %v1202_v36  ;;  %2188 = vmatpush.msk.msra.mxu2 %vm1221_vm14, %v1202_v36  ;;  %v1377_v36 = vld [vmem:[#allocation8 + $0x1e8] sm:$0xff] }
 0x369   : > { %v1058_v40 = vadd.f32 %v3150_v25, %v1033_v43 }
 0x36b   : > { %v1066_v42 = vmul.f32 0.5, %v1058_v40 }
 0x36d   : > { %v2377_v26 = vpop.eup %2376  ;;  %v1075_v32 = vmul.f32 1.442695, %v1066_v42  ;;  %v1035_v45 = vpop.f32.mrf.mxu0 }
 0x36e   : > { %v994_v46 = vpop.f32.mrf.mxu1  ;;  %1097 = vrot.lane.b32.xlu1 %v2377_v26, %s2688_s29 }
 0x36f   : > { %2378 = vpow2.f32 %v1075_v32  ;;  %v1036_v52 = vadd.f32 %v1035_v45, %v994_v46  ;;  %v2410_v32 = vld [vmem:[%s2856_s13 + $0x10] sm:$0xff] }
 0x371   : > { %v1059_v57 = vadd.f32 %v3150_v25, %v1036_v52 }
 0x373   : > { %v1067_v37 = vmul.f32 0.5, %v1059_v57 }
 0x375   : > { %v2379_v47 = vpop.eup %2378  ;;  %v1038_v48 = vpop.f32.mrf.mxu0  ;;  %v1077_v34 = vmul.f32 1.442695, %v1067_v37  ;;  %v1380_v37 = vld [vmem:[#allocation8 + $0x240] sm:$0xff] }
 0x376   : > { %v997_v50 = vpop.f32.mrf.mxu1  ;;  %1099 = vrot.lane.b32.xlu2 %v2379_v47, %s2688_s29  ;;  %1137 = vrot.lane.b32.xlu1 %v1057_v6, %s2689_s11 }
 0x377   : > { %v1039_v51 = vadd.f32 %v1038_v48, %v997_v50  ;;  %v2411_v48 = vld [vmem:[%s2856_s13 + $0x8] sm:$0xff] }
 0x379   : > { %v1060_v53 = vadd.f32 %v3150_v25, %v1039_v51  ;;  %v2412_v51 = vld [vmem:[%s2856_s13 + $0x18] sm:$0xff] }
 0x37b   : > { %v1068_v55 = vmul.f32 0.5, %v1060_v53 }
 0x37d   : > { %v1079_v58 = vmul.f32 1.442695, %v1068_v55  ;;  %v1041_v59 = vpop.f32.mrf.mxu0 }
 0x37e   : > { %v1000_v61 = vpop.f32.mrf.mxu1  ;;  %1139 = vrot.lane.b32.xlu2 %v1058_v40, %s2689_s11  ;;  %1141 = vrot.lane.b32.xlu1 %v1059_v57, %s2689_s11 }
 0x37f   : > { %2380 = vpow2.f32 %v1079_v58  ;;  %v1042_v49 = vadd.f32 %v1041_v59, %v1000_v61 }
 0x381   : > { %v1061_v63 = vadd.f32 %v3150_v25, %v1042_v49 }
 0x383   : > { %v1069_v1 = vmul.f32 0.5, %v1061_v63 }
 0x385   : > { %v2381_v3 = vpop.eup %2380  ;;  %v1081_v60 = vmul.f32 1.442695, %v1069_v1  ;;  %v1044_v4 = vpop.f32.mrf.mxu0 }
 0x386   : > { %v1003_v7 = vpop.f32.mrf.mxu1  ;;  %1103 = vrot.lane.b32.xlu2 %v2381_v3, %s2688_s29  ;;  %v2415_v3 = vld [vmem:[%s2856_s13 + $0x30] sm:$0xff] }
 0x387   : > { %2382 = vpow2.f32 %v1081_v60  ;;  %v1045_v9 = vadd.f32 %v1044_v4, %v1003_v7 }
 0x389   : > { %v1062_v10 = vadd.f32 %v3150_v25, %v1045_v9 }
 0x38b   : > { %v1070_v11 = vmul.f32 0.5, %v1062_v10 }
 0x38d   : > { %v2383_v33 = vpop.eup %2382  ;;  %v1083_v44 = vmul.f32 1.442695, %v1070_v11  ;;  %v1047_v12 = vpop.f32.mrf.mxu0 }
 0x38e   : > { %v1006_v2 = vpop.f32.mrf.mxu1  ;;  %1145 = vrot.lane.b32.xlu2 %v1061_v63, %s2689_s11  ;;  %1105 = vrot.lane.b32.xlu1 %v2383_v33, %s2688_s29  ;;  %v2414_v63 = vld [vmem:[%s2856_s13 + $0x20] sm:$0xff] }
 0x38f   : > { %2384 = vpow2.f32 %v1083_v44  ;;  %v1048_v19 = vadd.f32 %v1047_v12, %v1006_v2 }
 0x391   : > { %v1063_v14 = vadd.f32 %v3150_v25, %v1048_v19  ;;  %v1419_v19 = vld [vmem:[#allocation8 + $0x5d8] sm:$0xff] }
 0x393   : > { %v1071_v31 = vmul.f32 0.5, %v1063_v14 }
 0x395   : > { %v2385_v20 = vpop.eup %2384  ;;  %v1085_v0 = vmul.f32 1.442695, %v1071_v31  ;;  %v1050_v54 = vpop.f32.mrf.mxu0  ;;  %v1418_v31 = vld [vmem:[#allocation8 + $0x5d0] sm:$0xff] }
 0x396   : > { %v1009_v15 = vpop.f32.mrf.mxu1  ;;  %1147 = vrot.lane.b32.xlu2 %v1062_v10, %s2689_s11  ;;  %1107 = vrot.lane.b32.xlu1 %v2385_v20, %s2688_s29  ;;  %v1203_v10 = vld.sshfl [vmem:[#allocation1 + $0x8] sm:$0xff pattern:$0x75316420]  ;;  %v1417_v20 = vld [vmem:[#allocation8 + $0x5a8] sm:$0xff] }
 0x397   : > { %2386 = vpow2.f32 %v1085_v0  ;;  %v1051_v21 = vadd.f32 %v1050_v54, %v1009_v15  ;;  %2197 = vmatpush.msk.msrb.mxu3 %vm1221_vm14, %v1203_v10  ;;  %v1384_v0 = vld [vmem:[#allocation8 + $0x2a0] sm:$0xff]  ;;  %v1387_v54 = vld [vmem:[#allocation8 + $0x2d8] sm:$0xff]  ;;  %1467 = vmatpush.msra.mxu0 %v1418_v31 }
 0x398   : > { %1508 = vmatpush.msrb.mxu2 %v1387_v54  ;;  %v1416_v15 = vld [vmem:[#allocation8 + $0x5a0] sm:$0xff]  ;;  %v1358_v54 = vld [vmem:[#allocation8 + $0x30] sm:$0xff] }
 0x399   : > { %v1064_v8 = vadd.f32 %v3150_v25, %v1051_v21  ;;  %v1415_v21 = vld [vmem:[#allocation8 + $0x578] sm:$0xff]  ;;  %1468 = vmatpush.msra.mxu0 %v1416_v15  ;;  %v1396_v10 = vld [vmem:[#allocation8 + $0x3c0] sm:$0xff]  ;;  %v1390_v15 = vld [vmem:[#allocation8 + $0x330] sm:$0xff] }
 0x39a   : > { %v1360_v31 = vld [vmem:[#allocation8 + $0x60] sm:$0xff] }
 0x39b   : > { %v1072_v16 = vmul.f32 0.5, %v1064_v8 }
 0x39d   : > { %v2387_v17 = vpop.eup %2386  ;;  %v1087_v22 = vmul.f32 1.442695, %v1072_v16  ;;  %v1385_v16 = vld [vmem:[#allocation8 + $0x2a8] sm:$0xff] }
 0x39e   : > { %1149 = vrot.lane.b32.xlu2 %v1063_v14, %s2689_s11  ;;  %1109 = vrot.lane.b32.xlu1 %v2387_v17, %s2688_s29  ;;  %v1386_v14 = vld [vmem:[#allocation8 + $0x2d0] sm:$0xff] }
 0x39f   : > { %2388 = vpow2.f32 %v1087_v22  ;;  %1426 = vmatpush.msra.mxu1 %v1386_v14  ;;  %v1414_v17 = vld [vmem:[#allocation8 + $0x570] sm:$0xff]  ;;  %1509 = vmatpush.msrb.mxu2 %v1385_v16  ;;  %v1413_v22 = vld [vmem:[#allocation8 + $0x548] sm:$0xff]  ;;  %v1356_v16 = vld [vmem:[#allocation8] sm:$0xff] }
 0x3a0   : > { %2390 = vpow2.f32 %v1077_v34  ;;  %1469 = vmatpush.msra.mxu0 %v1414_v17  ;;  %v1412_v34 = vld [vmem:[#allocation8 + $0x540] sm:$0xff]  ;;  %v1393_v14 = vld [vmem:[#allocation8 + $0x368] sm:$0xff] }
 0x3a1   : > { %1427 = vmatpush.msra.mxu1 %v1384_v0  ;;  %v1392_v0 = vld [vmem:[#allocation8 + $0x360] sm:$0xff] }
 0x3a2   : > { %1470 = vmatpush.msra.mxu0 %v1412_v34  ;;  %v1388_v17 = vld [vmem:[#allocation8 + $0x300] sm:$0xff] }
 0x3a5   : > { %v2389_v56 = vpop.eup %2388 }
 0x3a6   : > { %1111 = vrot.lane.b32.xlu0 %v2389_v56, %s2688_s29  ;;  %v2391_v13 = vpop.eup %2390  ;;  %v1383_v56 = vld [vmem:[#allocation8 + $0x278] sm:$0xff] }
 0x3a7   : > { %1510 = vmatpush.msrb.mxu2 %v1383_v56  ;;  %v1170_v56 = vld [vmem:[#allocation11 + $0x2] sm:$0x3] }
 0x3a8   : > { %v3243_v34 = vperm.slane %v1170_v56, 0 }
 0x3ae   : > { %1151 = vrot.lane.b32.xlu0 %v1064_v8, %s2689_s11  ;;  %v1382_v8 = vld [vmem:[#allocation8 + $0x270] sm:$0xff] }
 0x3af   : > { %1428 = vmatpush.msra.mxu1 %v1382_v8  ;;  %v1389_v8 = vld [vmem:[#allocation8 + $0x308] sm:$0xff] }
 0x3b1   : > { %1429 = vmatpush.msra.mxu1 %v1380_v37  ;;  %v3241_v37 = vperm.slane %v1170_v56, 1  ;;  %v1614_v56 = vld [vmem:[#allocation8 + $0x250] sm:$0xff] }
 0x3b6   : > { %1101 = vrot.lane.b32.xlu0 %v2391_v13, %s2688_s29  ;;  %v1411_v13 = vld [vmem:[#allocation8 + $0x518] sm:$0xff]  ;;  %s2616_s29 = scalar_lea.hbm %s3438_s6, 256 }
 0x3b7   : > { %p2618_p6 = scmp.lt.s32.totalorder %s2616_s29, %s2612_s7 }
 0x3b9   : > { %p2619_p7 = por %p2618_p6, %p2617_p5 }
 0x3bb   : > { %p2620_p8 = pnand %p2619_p7, %p2615_p11 }
 0x3be   : > { %1143 = vrot.lane.b32.xlu0 %v1060_v53, %s2689_s11  ;;  %v2413_v53 = vld [vmem:[%s2856_s13 + $0x28] sm:$0xff] }
 0x3d0   : > { %v1100_v30 = vpop.permute.xlu2 %1099 }
 0x3d1   : > { %v1122_v50 = vmul.f32 %v2411_v48, %v1100_v30  ;;  %v1381_v30 = vld [vmem:[#allocation8 + $0x248] sm:$0xff] }
 0x3d2   : > { %1511 = vmatpush.msrb.mxu2 %v1381_v30  ;;  %v1373_v48 = vld [vmem:[#allocation8 + $0x188] sm:$0xff] }
 0x3d8   : > { %v3178_v28 = vpop.permute.xlu2 %1139 }
 0x3d9   : > { %v1162_v58 = vadd.f32 %v3178_v28, %v1122_v50  ;;  %v1370_v50 = vld [vmem:[#allocation8 + $0x150] sm:$0xff] }
 0x3e0   : > { %v1098_v23 = vpop.permute.xlu1 %1097  ;;  %v1104_v39 = vpop.permute.xlu2 %1103 }
 0x3e1   : > { %v1121_v43 = vmul.f32 %v2409_v41, %v1098_v23  ;;  %v1124_v52 = vmul.f32 %v2412_v51, %v1104_v39  ;;  %v1410_v39 = vld [vmem:[#allocation8 + $0x510] sm:$0xff] }
 0x3e2   : > { %1471 = vmatpush.msra.mxu0 %v1410_v39  ;;  %v1374_v41 = vld [vmem:[#allocation8 + $0x1b0] sm:$0xff] }
 0x3e3   : > { %v1402_v51 = vld [vmem:[#allocation8 + $0x450] sm:$0xff] }
 0x3e8   : > { %v3176_v18 = vpop.permute.xlu1 %1137  ;;  %v3187_v38 = vpop.permute.xlu2 %1145 }
 0x3e9   : > { %v1161_v26 = vadd.f32 %v3176_v18, %v1121_v43  ;;  %v1406_v43 = vld [vmem:[#allocation8 + $0x4b0] sm:$0xff] }
 0x3f0   : > { %v3180_v29 = vpop.permute.xlu1 %1141  ;;  %v3197_v47 = vpop.permute.xlu2 %1147 }
 0x3f8   : > { %v3212_v4 = vpop.permute.xlu2 %1149 }
 0x400   : > { %v1106_v25 = vpop.permute.xlu1 %1105 }
 0x401   : > { %v1125_v1 = vmul.f32 %v2414_v63, %v1106_v25  ;;  %v1379_v25 = vld [vmem:[#allocation8 + $0x218] sm:$0xff] }
 0x402   : > { %1512 = vmatpush.msrb.mxu2 %v1379_v25  ;;  %v1367_v63 = vld [vmem:[#allocation8 + $0xf8] sm:$0xff] }
 0x403   : > { %v1165_v7 = vadd.f32 %v3187_v38, %v1125_v1  ;;  %v1398_v1 = vld [vmem:[#allocation8 + $0x3f0] sm:$0xff] }
 0x404   : > { %1513 = vmatpush.msrb.mxu2 %v1377_v36 }
 0x408   : > { %v1108_v40 = vpop.permute.xlu1 %1107 }
 0x409   : > { %v1126_v55 = vmul.f32 %v2413_v53, %v1108_v40  ;;  %v1405_v40 = vld [vmem:[#allocation8 + $0x488] sm:$0xff]  ;;  %v1371_v53 = vld [vmem:[#allocation8 + $0x158] sm:$0xff] }
 0x40b   : > { %v1166_v49 = vadd.f32 %v3197_v47, %v1126_v55  ;;  %v1368_v55 = vld [vmem:[#allocation8 + $0x120] sm:$0xff] }
 0x410   : > { %v1110_v61 = vpop.permute.xlu1 %1109 }
 0x411   : > { %v1127_v60 = vmul.f32 %v2415_v3, %v1110_v61  ;;  %v1369_v61 = vld [vmem:[#allocation8 + $0x128] sm:$0xff] }
 0x413   : > { %v1167_v9 = vadd.f32 %v3212_v4, %v1127_v60  ;;  %v1397_v60 = vld [vmem:[#allocation8 + $0x3c8] sm:$0xff] }
 0x418   : > { %v1112_v62 = vpop.permute.xlu0 %1111 }
 0x419   : > { %v1128_v27 = vmul.f32 %v2408_v5, %v1112_v62  ;;  %v1378_v62 = vld [vmem:[#allocation8 + $0x210] sm:$0xff]  ;;  %v1376_v5 = vld [vmem:[#allocation8 + $0x1e0] sm:$0xff] }
 0x41a   : > { %1430 = vmatpush.msra.mxu1 %v1378_v62 }
 0x41c   : > { %1431 = vmatpush.msra.mxu1 %v1376_v5 }
 0x41e   : > { %1432 = vmatpush.msra.mxu1 %v1374_v41 }
 0x420   : > { %v3183_v6 = vpop.permute.xlu0 %1151 }
 0x421   : > { %v1168_v35 = vadd.f32 %v3183_v6, %v1128_v27  ;;  %v1408_v27 = vld [vmem:[#allocation8 + $0x4e0] sm:$0xff] }
 0x422   : > { %1472 = vmatpush.msra.mxu0 %v1408_v27 }
 0x423   : > { %1198 = vrot.lane.b32.xlu0 %v1168_v35, %s2690_s16  ;;  %v1407_v35 = vld [vmem:[#allocation8 + $0x4b8] sm:$0xff] }
 0x424   : > { %1473 = vmatpush.msra.mxu0 %v1406_v43 }
 0x428   : > { %v1102_v42 = vpop.permute.xlu0 %1101 }
 0x429   : > { %v1123_v45 = vmul.f32 %v2410_v32, %v1102_v42  ;;  %v1375_v42 = vld [vmem:[#allocation8 + $0x1b8] sm:$0xff] }
 0x42a   : > { %1514 = vmatpush.msrb.mxu2 %v1375_v42 }
 0x42b   : > { %v1163_v46 = vadd.f32 %v3180_v29, %v1123_v45  ;;  %1184 = vrot.lane.b32.xlu0 %v1161_v26, %s2690_s16  ;;  %v1372_v26 = vld [vmem:[#allocation8 + $0x180] sm:$0xff] }
 0x42c   : > { %v1404_v45 = vld [vmem:[#allocation8 + $0x480] sm:$0xff]  ;;  %1433 = vmatpush.msra.mxu1 %v1372_v26  ;;  %1515 = vmatpush.msrb.mxu2 %v1373_v48 }
 0x42d   : > { %1188 = vrot.lane.b32.xlu1 %v1163_v46, %s2690_s16  ;;  %v1403_v46 = vld [vmem:[#allocation8 + $0x458] sm:$0xff]  ;;  %1474 = vmatpush.msra.mxu0 %v1404_v45 }
 0x42e   : > { %1434 = vmatpush.msra.mxu1 %v1370_v50  ;;  %1516 = vmatpush.msrb.mxu2 %v1371_v53 }
 0x42f   : > { %1475 = vmatpush.msra.mxu0 %v1402_v51 }
 0x430   : > { %v3202_v57 = vpop.permute.xlu0 %1143  ;;  %1435 = vmatpush.msra.mxu1 %v1368_v55  ;;  %1517 = vmatpush.msrb.mxu2 %v1369_v61 }
 0x431   : > { %v1164_v59 = vadd.f32 %v3202_v57, %v1124_v52  ;;  %v1401_v52 = vld [vmem:[#allocation8 + $0x428] sm:$0xff] }
 0x432   : > { %1518 = vmatpush.msrb.mxu2 %v1367_v63 }
 0x433   : > { %1190 = vrot.lane.b32.xlu2 %v1164_v59, %s2690_s16  ;;  %1186 = vrot.lane.b32.xlu0 %v1162_v58, %s2690_s16  ;;  %v1400_v58 = vld [vmem:[#allocation8 + $0x420] sm:$0xff]  ;;  %v1399_v59 = vld [vmem:[#allocation8 + $0x3f8] sm:$0xff] }
 0x434   : > { %1476 = vmatpush.msra.mxu0 %v1400_v58 }
 0x435   : > { %1194 = vrot.lane.b32.xlu1 %v1166_v49, %s2690_s16  ;;  %v1366_v49 = vld [vmem:[#allocation8 + $0xf0] sm:$0xff] }
 0x436   : > { %1436 = vmatpush.msra.mxu1 %v1366_v49  ;;  %1477 = vmatpush.msra.mxu0 %v1398_v1 }
 0x438   : > { %1478 = vmatpush.msra.mxu0 %v1396_v10 }
 0x43b   : > { %1192 = vrot.lane.b32.xlu0 %v1165_v7, %s2690_s16  ;;  %1196 = vrot.lane.b32.xlu2 %v1167_v9, %s2690_s16  ;;  %v1364_v7 = vld [vmem:[#allocation8 + $0xc0] sm:$0xff]  ;;  %v1365_v9 = vld [vmem:[#allocation8 + $0xc8] sm:$0xff] }
 0x43c   : > { %1437 = vmatpush.msra.mxu1 %v1364_v7  ;;  %1519 = vmatpush.msrb.mxu2 %v1365_v9  ;;  %v1652_v7 = vld [vmem:[#allocation8 + $0x5e0] sm:$0xff]  ;;  %v1621_v9 = vld [vmem:[#allocation8 + $0x2e8] sm:$0xff] }
 0x48d   : > { %v1191_v2 = vpop.permute.xlu2 %1190 }
 0x495   : > { %v3219_v11 = vpop.permute.xlu0 %1198  ;;  %v1197_v3 = vpop.permute.xlu2 %1196 }
 0x496   : > { %2196 = vmatmul.msk.f32.vlgmr.msra.gmra.mxu3 %vm1204_vm15, %v3219_v11 }
 0x497   : > { %1549 = vmatpush.msra.mxu3 %v1419_v19  ;;  %v1361_v19 = vld [vmem:[#allocation8 + $0x68] sm:$0xff] }
 0x499   : > { %1550 = vmatpush.msra.mxu3 %v1417_v20  ;;  %v1359_v20 = vld [vmem:[#allocation8 + $0x38] sm:$0xff] }
 0x49b   : > { %1551 = vmatpush.msra.mxu3 %v1415_v21  ;;  %v1357_v21 = vld [vmem:[#allocation8 + $0x8] sm:$0xff] }
 0x49d   : > { %v1185_v33 = vpop.permute.xlu0 %1184  ;;  %1552 = vmatpush.msra.mxu3 %v1413_v22 }
 0x49e   : > { %2189 = vmatmul.msk.f32.vlgmr.msra.gmra.mxu2 %vm1204_vm15, %v1185_v33  ;;  %2198 = vmatmul.msk.f32.vlgmr.msrb.gmra.mxu3 %vm1204_vm15, %v1185_v33  ;;  %v1363_v33 = vld [vmem:[#allocation8 + $0x98] sm:$0xff] }
 0x49f   : > { %v1189_v12 = vpop.permute.xlu1 %1188  ;;  %1553 = vmatpush.msra.mxu3 %v1411_v13  ;;  %1520 = vmatpush.msrb.mxu2 %v1363_v33 }
 0x4a1   : > { %1554 = vmatpush.msra.mxu3 %v1409_v24  ;;  %1521 = vmatpush.msrb.mxu2 %v1361_v19 }
 0x4a3   : > { %1555 = vmatpush.msra.mxu3 %v1407_v35  ;;  %1522 = vmatpush.msrb.mxu2 %v1359_v20  ;;  %v1616_v20 = vld [vmem:[#allocation8 + $0x280] sm:$0xff] }
 0x4a5   : > { %v1187_v44 = vpop.permute.xlu0 %1186  ;;  %1556 = vmatpush.msra.mxu3 %v1405_v40  ;;  %1523 = vmatpush.msrb.mxu2 %v1357_v21 }
 0x4a6   : > { %2190 = vmatmul.msk.f32.gmra.mxu2 %vm1204_vm15, %v1187_v44  ;;  %2199 = vmatmul.msk.f32.gmra.mxu3 %vm1204_vm15, %v1187_v44  ;;  %v1395_v44 = vld [vmem:[#allocation8 + $0x398] sm:$0xff] }
 0x4a7   : > { %v1195_v32 = vpop.permute.xlu1 %1194  ;;  %1557 = vmatpush.msra.mxu3 %v1403_v46  ;;  %1742 = vmatpush.msra.mxu2 %v1621_v9  ;;  %v1637_v9 = vld [vmem:[#allocation8 + $0x468] sm:$0xff] }
 0x4a9   : > { %1558 = vmatpush.msra.mxu3 %v1401_v52 }
 0x4ab   : > { %1559 = vmatpush.msra.mxu3 %v1399_v59 }
 0x4ad   : > { %v1193_v23 = vpop.permute.xlu0 %1192  ;;  %1560 = vmatpush.msra.mxu3 %v1397_v60  ;;  %v1620_v60 = vld [vmem:[#allocation8 + $0x2e0] sm:$0xff] }
 0x4ae   : > { %2191 = vmatmul.msk.f32.gmra.mxu2 %vm1204_vm15, %v1189_v12  ;;  %2200 = vmatmul.msk.f32.gmra.mxu3 %vm1204_vm15, %v1189_v12  ;;  %v1362_v12 = vld [vmem:[#allocation8 + $0x90] sm:$0xff] }
 0x4af   : > { %1561 = vmatpush.msra.mxu3 %v1395_v44  ;;  %1438 = vmatpush.msra.mxu1 %v1362_v12  ;;  %v1618_v44 = vld [vmem:[#allocation8 + $0x2b0] sm:$0xff]  ;;  %v1653_v12 = vld [vmem:[#allocation8 + $0x5e8] sm:$0xff] }
 0x4b1   : > { %1562 = vmatpush.msra.mxu3 %v1393_v14  ;;  %1439 = vmatpush.msra.mxu1 %v1360_v31  ;;  %v1619_v31 = vld [vmem:[#allocation8 + $0x2b8] sm:$0xff] }
 0x4b2   : > { %1743 = vmatpush.msra.mxu2 %v1619_v31  ;;  %v1603_v31 = vld [vmem:[#allocation8 + $0x138] sm:$0xff] }
 0x4b3   : > { %1440 = vmatpush.msra.mxu1 %v1358_v54  ;;  %v1617_v54 = vld [vmem:[#allocation8 + $0x288] sm:$0xff] }
 0x4b4   : > { %1744 = vmatpush.msra.mxu2 %v1617_v54 }
 0x4b5   : > { %1441 = vmatpush.msra.mxu1 %v1356_v16 }
 0x4b6   : > { %2192 = vmatmul.msk.f32.gmra.mxu2 %vm1204_vm15, %v1191_v2  ;;  %2201 = vmatmul.msk.f32.gmra.mxu3 %vm1204_vm15, %v1191_v2  ;;  %v1394_v2 = vld [vmem:[#allocation8 + $0x390] sm:$0xff] }
 0x4b7   : > { %1479 = vmatpush.msra.mxu0 %v1394_v2  ;;  %1660 = vmatpush.msrb.mxu1 %v1620_v60  ;;  %v1650_v2 = vld [vmem:[#allocation8 + $0x5b0] sm:$0xff]  ;;  %v1636_v60 = vld [vmem:[#allocation8 + $0x460] sm:$0xff] }
 0x4b9   : > { %1480 = vmatpush.msra.mxu0 %v1392_v0  ;;  %v1651_v0 = vld [vmem:[#allocation8 + $0x5b8] sm:$0xff]  ;;  %1661 = vmatpush.msrb.mxu1 %v1618_v44 }
 0x4bb   : > { %1481 = vmatpush.msra.mxu0 %v1390_v15  ;;  %1662 = vmatpush.msrb.mxu1 %v1616_v20  ;;  %v1635_v20 = vld [vmem:[#allocation8 + $0x438] sm:$0xff] }
 0x4bd   : > { %1482 = vmatpush.msra.mxu0 %v1388_v17  ;;  %1663 = vmatpush.msrb.mxu1 %v1614_v56  ;;  %v1631_v56 = vld [vmem:[#allocation8 + $0x3d8] sm:$0xff] }
 0x4be   : > { %2193 = vmatmul.msk.f32.gmra.mxu2 %vm1204_vm15, %v1193_v23  ;;  %2202 = vmatmul.msk.f32.gmra.mxu3 %vm1204_vm15, %v1193_v23 }
 0x4bf   : > { %1701 = vmatpush.msrb.mxu0 %v1652_v7  ;;  %v1605_v7 = vld [vmem:[#allocation8 + $0x168] sm:$0xff] }
 0x4c1   : > { %1702 = vmatpush.msrb.mxu0 %v1650_v2 }
 0x4c6   : > { %2194 = vmatmul.msk.f32.gmra.mxu2 %vm1204_vm15, %v1195_v32  ;;  %2203 = vmatmul.msk.f32.gmra.mxu3 %vm1204_vm15, %v1195_v32 }
 0x4ce   : > { %2195 = vmatmul.msk.f32.gmra.mxu2 %vm1204_vm15, %v1197_v3  ;;  %2204 = vmatmul.msk.f32.gmra.mxu3 %vm1204_vm15, %v1197_v3 }
 0x4d6   : > { %2205 = vmatmul.msk.f32.gmra.mxu3 %vm1204_vm15, %v3219_v11  ;;  %v1391_v11 = vld [vmem:[#allocation8 + $0x338] sm:$0xff] }
 0x4d7   : > { %1563 = vmatpush.msra.mxu3 %v1391_v11  ;;  %v1648_v11 = vld [vmem:[#allocation8 + $0x580] sm:$0xff] }
 0x4d8   : > { %1703 = vmatpush.msrb.mxu0 %v1648_v11  ;;  %v1632_v11 = vld [vmem:[#allocation8 + $0x400] sm:$0xff] }
 0x4d9   : > { %1564 = vmatpush.msra.mxu3 %v1389_v8  ;;  %v1649_v8 = vld [vmem:[#allocation8 + $0x588] sm:$0xff] }
 0x4db   : > { %1783 = vmatpush.msrb.mxu3 %v1653_v12 }
 0x4dd   : > { %1784 = vmatpush.msrb.mxu3 %v1651_v0  ;;  %v1600_v0 = vld [vmem:[#allocation8 + $0x100] sm:$0xff] }
 0x4df   : > { %1785 = vmatpush.msrb.mxu3 %v1649_v8  ;;  %v1598_v8 = vld [vmem:[#allocation8 + $0xd0] sm:$0xff] }
 0x519   : > { %v3239_v22 = vpop.f32.mrf.mxu3 }
 0x51a   : > { %v1265_v44 = vadd.f32 %v3239_v22, %v3243_v34 }
 0x51c   : > { %vm1322_vm14 = vcmp.gt.f32.partialorder %v1265_v44, 0.0 }
 0x521   : > { %v1243_v13 = vpop.f32.mrf.mxu2  ;;  %v1284_v23 = vpop.f32.mrf.mxu3 }
 0x522   : > { %v1244_v30 = vadd.f32 %v1243_v13, %v3243_v34  ;;  %v1285_v62 = vadd.f32 %v1284_v23, %v3241_v37  ;;  %v1646_v13 = vld [vmem:[#allocation8 + $0x550] sm:$0xff]  ;;  %v1615_v23 = vld [vmem:[#allocation8 + $0x258] sm:$0xff] }
 0x523   : > { %1704 = vmatpush.msrb.mxu0 %v1646_v13  ;;  %1745 = vmatpush.msra.mxu2 %v1615_v23 }
 0x524   : > { %vm1308_vm0 = vcmp.gt.f32.partialorder %v1244_v30, 0.0  ;;  %v1324_v39 = vmul.f32 0.01, %v1244_v30  ;;  %vm1309_vm1 = vcmp.gt.f32.partialorder %v1285_v62, 0.0  ;;  %v1325_v24 = vmul.f32 0.01, %v1285_v62 }
 0x526   : > { %v1340_v25 = vsel %vm1308_vm0, %v1244_v30, %v1324_v39  ;;  %v1341_v5 = vsel %vm1309_vm1, %v1285_v62, %v1325_v24  ;;  %v1647_v30 = vld [vmem:[#allocation8 + $0x558] sm:$0xff]  ;;  %v1612_v62 = vld [vmem:[#allocation8 + $0x220] sm:$0xff]  ;;  %vm2006_vm0 = vcmask 64512   ;;  %vm2015_vm1 = vcmask 130112  }
 0x527   : > { %1442 = vmatmul.f32.vlgmr.msra.gmra.mxu1 %v1340_v25  ;;  %1483 = vmatmul.f32.vlgmr.msra.gmra.mxu0 %v1341_v5  ;;  %v1644_v39 = vld [vmem:[#allocation8 + $0x520] sm:$0xff] }
 0x528   : > { %1524 = vmatmul.f32.vlgmr.msrb.gmra.mxu2 %v1340_v25  ;;  %1565 = vmatmul.f32.vlgmr.msra.gmra.mxu3 %v1341_v5  ;;  %v1613_v5 = vld [vmem:[#allocation8 + $0x228] sm:$0xff] }
 0x529   : > { %v1246_v27 = vpop.f32.mrf.mxu2  ;;  %v1287_v35 = vpop.f32.mrf.mxu3  ;;  %1786 = vmatpush.msrb.mxu3 %v1647_v30  ;;  %1664 = vmatpush.msrb.mxu1 %v1612_v62  ;;  %v1628_v62 = vld [vmem:[#allocation8 + $0x3a0] sm:$0xff] }
 0x52a   : > { %v1247_v36 = vadd.f32 %v1246_v27, %v3243_v34  ;;  %v1288_v41 = vadd.f32 %v1287_v35, %v3241_v37  ;;  %v1645_v27 = vld [vmem:[#allocation8 + $0x528] sm:$0xff]  ;;  %1705 = vmatpush.msrb.mxu0 %v1644_v39  ;;  %1746 = vmatpush.msra.mxu2 %v1613_v5  ;;  %v1626_v5 = vld [vmem:[#allocation8 + $0x370] sm:$0xff] }
 0x52b   : > { %1787 = vmatpush.msrb.mxu3 %v1645_v27  ;;  %v1597_v39 = vld [vmem:[#allocation8 + $0xa8] sm:$0xff]  ;;  %v1595_v27 = vld [vmem:[#allocation8 + $0x78] sm:$0xff] }
 0x52c   : > { %vm1310_vm2 = vcmp.gt.f32.partialorder %v1247_v36, 0.0  ;;  %v1326_v43 = vmul.f32 0.01, %v1247_v36  ;;  %vm1311_vm3 = vcmp.gt.f32.partialorder %v1288_v41, 0.0  ;;  %v1327_v40 = vmul.f32 0.01, %v1288_v41 }
 0x52e   : > { %v1342_v42 = vsel %vm1310_vm2, %v1247_v36, %v1326_v43  ;;  %v1343_v26 = vsel %vm1311_vm3, %v1288_v41, %v1327_v40  ;;  %v1610_v41 = vld [vmem:[#allocation8 + $0x1f0] sm:$0xff]  ;;  %v1611_v40 = vld [vmem:[#allocation8 + $0x1f8] sm:$0xff] }
 0x52f   : > { %1445 = vmatmul.f32.gmra.mxu1 %v1342_v42  ;;  %1486 = vmatmul.f32.gmra.mxu0 %v1343_v26  ;;  %v1642_v43 = vld [vmem:[#allocation8 + $0x4f0] sm:$0xff] }
 0x530   : > { %1527 = vmatmul.f32.gmra.mxu2 %v1342_v42  ;;  %1568 = vmatmul.f32.gmra.mxu3 %v1343_v26  ;;  %v1643_v42 = vld [vmem:[#allocation8 + $0x4f8] sm:$0xff] }
 0x531   : > { %v1249_v32 = vpop.f32.mrf.mxu2  ;;  %v1290_v45 = vpop.f32.mrf.mxu3  ;;  %1665 = vmatpush.msrb.mxu1 %v1610_v41  ;;  %1706 = vmatpush.msrb.mxu0 %v1642_v43  ;;  %v1593_v41 = vld [vmem:[#allocation8 + $0x48] sm:$0xff]  ;;  %v1624_v43 = vld [vmem:[#allocation8 + $0x340] sm:$0xff] }
 0x532   : > { %v1250_v46 = vadd.f32 %v1249_v32, %v3243_v34  ;;  %v1291_v48 = vadd.f32 %v1290_v45, %v3241_v37  ;;  %1747 = vmatpush.msra.mxu2 %v1611_v40  ;;  %1788 = vmatpush.msrb.mxu3 %v1643_v42  ;;  %v1590_v40 = vld [vmem:[#allocation8 + $0x10] sm:$0xff]  ;;  %v1591_v42 = vld [vmem:[#allocation8 + $0x18] sm:$0xff] }
 0x534   : > { %vm1312_vm4 = vcmp.gt.f32.partialorder %v1250_v46, 0.0  ;;  %v1328_v50 = vmul.f32 0.01, %v1250_v46  ;;  %vm1313_vm5 = vcmp.gt.f32.partialorder %v1291_v48, 0.0  ;;  %v1329_v51 = vmul.f32 0.01, %v1291_v48 }
 0x536   : > { %v1344_v52 = vsel %vm1312_vm4, %v1250_v46, %v1328_v50  ;;  %v1345_v53 = vsel %vm1313_vm5, %v1291_v48, %v1329_v51  ;;  %v1608_v48 = vld [vmem:[#allocation8 + $0x1c0] sm:$0xff]  ;;  %v1609_v51 = vld [vmem:[#allocation8 + $0x1c8] sm:$0xff] }
 0x537   : > { %1448 = vmatmul.f32.gmra.mxu1 %v1344_v52  ;;  %1489 = vmatmul.f32.gmra.mxu0 %v1345_v53  ;;  %v1640_v50 = vld [vmem:[#allocation8 + $0x4c0] sm:$0xff] }
 0x538   : > { %1530 = vmatmul.f32.gmra.mxu2 %v1344_v52  ;;  %1571 = vmatmul.f32.gmra.mxu3 %v1345_v53  ;;  %v1641_v52 = vld [vmem:[#allocation8 + $0x4c8] sm:$0xff]  ;;  %v1606_v53 = vld [vmem:[#allocation8 + $0x190] sm:$0xff] }
 0x539   : > { %v1252_v55 = vpop.f32.mrf.mxu2  ;;  %v1293_v58 = vpop.f32.mrf.mxu3  ;;  %1666 = vmatpush.msrb.mxu1 %v1608_v48  ;;  %1707 = vmatpush.msrb.mxu0 %v1640_v50 }
 0x53a   : > { %v1253_v59 = vadd.f32 %v1252_v55, %v3243_v34  ;;  %v1294_v61 = vadd.f32 %v1293_v58, %v3241_v37  ;;  %v1638_v55 = vld [vmem:[#allocation8 + $0x490] sm:$0xff]  ;;  %1748 = vmatpush.msra.mxu2 %v1609_v51  ;;  %1789 = vmatpush.msrb.mxu3 %v1641_v52 }
 0x53b   : > { %1667 = vmatpush.msrb.mxu1 %v1606_v53  ;;  %1708 = vmatpush.msrb.mxu0 %v1638_v55 }
 0x53c   : > { %vm1314_vm6 = vcmp.gt.f32.partialorder %v1253_v59, 0.0  ;;  %v1330_v49 = vmul.f32 0.01, %v1253_v59  ;;  %vm1315_vm7 = vcmp.gt.f32.partialorder %v1294_v61, 0.0  ;;  %v1331_v63 = vmul.f32 0.01, %v1294_v61 }
 0x53d   : > { %1709 = vmatpush.msrb.mxu0 %v1636_v60 }
 0x53e   : > { %v1346_v1 = vsel %vm1314_vm6, %v1253_v59, %v1330_v49  ;;  %v1347_v3 = vsel %vm1315_vm7, %v1294_v61, %v1331_v63  ;;  %v1607_v61 = vld [vmem:[#allocation8 + $0x198] sm:$0xff] }
 0x53f   : > { %1451 = vmatmul.f32.gmra.mxu1 %v1346_v1  ;;  %1492 = vmatmul.f32.gmra.mxu0 %v1347_v3  ;;  %v1639_v49 = vld [vmem:[#allocation8 + $0x498] sm:$0xff] }
 0x540   : > { %1533 = vmatmul.f32.gmra.mxu2 %v1346_v1  ;;  %1574 = vmatmul.f32.gmra.mxu3 %v1347_v3  ;;  %v1604_v3 = vld [vmem:[#allocation8 + $0x160] sm:$0xff] }
 0x541   : > { %v1255_v10 = vpop.f32.mrf.mxu2  ;;  %v1296_v33 = vpop.f32.mrf.mxu3  ;;  %1749 = vmatpush.msra.mxu2 %v1607_v61  ;;  %1790 = vmatpush.msrb.mxu3 %v1639_v49 }
 0x542   : > { %v1256_v19 = vadd.f32 %v1255_v10, %v3243_v34  ;;  %v1297_v14 = vadd.f32 %v1296_v33, %v3241_v37  ;;  %1668 = vmatpush.msrb.mxu1 %v1604_v3 }
 0x543   : > { %1750 = vmatpush.msra.mxu2 %v1605_v7  ;;  %1791 = vmatpush.msrb.mxu3 %v1637_v9 }
 0x544   : > { %vm1316_vm8 = vcmp.gt.f32.partialorder %v1256_v19, 0.0  ;;  %v1332_v15 = vmul.f32 0.01, %v1256_v19  ;;  %vm1317_vm9 = vcmp.gt.f32.partialorder %v1297_v14, 0.0  ;;  %v1333_v21 = vmul.f32 0.01, %v1297_v14 }
 0x545   : > { %1751 = vmatpush.msra.mxu2 %v1603_v31  ;;  %1792 = vmatpush.msrb.mxu3 %v1635_v20 }
 0x546   : > { %v1348_v16 = vsel %vm1316_vm8, %v1256_v19, %v1332_v15  ;;  %v1349_v17 = vsel %vm1317_vm9, %v1297_v14, %v1333_v21  ;;  %v1602_v19 = vld [vmem:[#allocation8 + $0x130] sm:$0xff]  ;;  %v1601_v15 = vld [vmem:[#allocation8 + $0x108] sm:$0xff] }
 0x547   : > { %1454 = vmatmul.f32.gmra.mxu1 %v1348_v16  ;;  %1495 = vmatmul.f32.gmra.mxu0 %v1349_v17  ;;  %v1634_v14 = vld [vmem:[#allocation8 + $0x430] sm:$0xff]  ;;  %v1633_v21 = vld [vmem:[#allocation8 + $0x408] sm:$0xff] }
 0x548   : > { %1536 = vmatmul.f32.gmra.mxu2 %v1348_v16  ;;  %1577 = vmatmul.f32.gmra.mxu3 %v1349_v17  ;;  %v1630_v16 = vld [vmem:[#allocation8 + $0x3d0] sm:$0xff]  ;;  %v1599_v17 = vld [vmem:[#allocation8 + $0xd8] sm:$0xff] }
 0x549   : > { %v1258_v24 = vpop.f32.mrf.mxu2  ;;  %v1299_v25 = vpop.f32.mrf.mxu3  ;;  %1669 = vmatpush.msrb.mxu1 %v1602_v19  ;;  %1710 = vmatpush.msrb.mxu0 %v1634_v14 }
 0x54a   : > { %v1259_v35 = vadd.f32 %v1258_v24, %v3243_v34  ;;  %v1300_v36 = vadd.f32 %v1299_v25, %v3241_v37  ;;  %1752 = vmatpush.msra.mxu2 %v1601_v15  ;;  %1793 = vmatpush.msrb.mxu3 %v1633_v21  ;;  %v1629_v24 = vld [vmem:[#allocation8 + $0x3a8] sm:$0xff]  ;;  %v1594_v25 = vld [vmem:[#allocation8 + $0x70] sm:$0xff] }
 0x54b   : > { %1670 = vmatpush.msrb.mxu1 %v1600_v0  ;;  %1711 = vmatpush.msrb.mxu0 %v1632_v11 }
 0x54c   : > { %vm1318_vm10 = vcmp.gt.f32.partialorder %v1259_v35, 0.0  ;;  %v1334_v26 = vmul.f32 0.01, %v1259_v35  ;;  %vm1319_vm11 = vcmp.gt.f32.partialorder %v1300_v36, 0.0  ;;  %v1335_v32 = vmul.f32 0.01, %v1300_v36  ;;  %1753 = vmatpush.msra.mxu2 %v1599_v17  ;;  %1794 = vmatpush.msrb.mxu3 %v1631_v56 }
 0x54d   : > { %1671 = vmatpush.msrb.mxu1 %v1598_v8  ;;  %1712 = vmatpush.msrb.mxu0 %v1630_v16 }
 0x54e   : > { %v1350_v45 = vsel %vm1318_vm10, %v1259_v35, %v1334_v26  ;;  %v1351_v46 = vsel %vm1319_vm11, %v1300_v36, %v1335_v32  ;;  %1754 = vmatpush.msra.mxu2 %v1597_v39  ;;  %1795 = vmatpush.msrb.mxu3 %v1629_v24  ;;  %v1592_v35 = vld [vmem:[#allocation8 + $0x40] sm:$0xff]  ;;  %v1627_v36 = vld [vmem:[#allocation8 + $0x378] sm:$0xff]  ;;  %v1625_v26 = vld [vmem:[#allocation8 + $0x348] sm:$0xff] }
 0x54f   : > { %1457 = vmatmul.f32.gmra.mxu1 %v1350_v45  ;;  %1498 = vmatmul.f32.gmra.mxu0 %v1351_v46  ;;  %v1622_v32 = vld [vmem:[#allocation8 + $0x310] sm:$0xff]  ;;  %v3278_v39 = vld [vmem:[#allocation8 + $0x5c8] sm:$0xff] }
 0x550   : > { %1539 = vmatmul.f32.gmra.mxu2 %v1350_v45  ;;  %1580 = vmatmul.f32.gmra.mxu3 %v1351_v46  ;;  %v1623_v45 = vld [vmem:[#allocation8 + $0x318] sm:$0xff]  ;;  %v1420_v46 = vld [vmem:[#allocation11 + $0x4] sm:$0x3] }
 0x551   : > { %v1261_v58 = vpop.f32.mrf.mxu2  ;;  %v1302_v59 = vpop.f32.mrf.mxu3  ;;  %1713 = vmatpush.msrb.mxu0 %v1628_v62  ;;  %1755 = vmatpush.msra.mxu2 %v1595_v27  ;;  %v3262_v48 = vperm.slane %v1420_v46, 0  ;;  %v3265_v55 = vperm.slane %v1420_v46, 1  ;;  %v3275_v62 = vld [vmem:[#allocation8 + $0x5f8] sm:$0xff] }
 0x552   : > { %v1262_v63 = vadd.f32 %v1261_v58, %v3243_v34  ;;  %v1303_v1 = vadd.f32 %v1302_v59, %v3241_v37  ;;  %v1338_v34 = vmul.f32 0.01, %v1265_v44  ;;  %1796 = vmatpush.msrb.mxu3 %v1627_v36  ;;  %v3280_v27 = vld [vmem:[#allocation8 + $0x598] sm:$0xff] }
 0x553   : > { %1714 = vmatpush.msrb.mxu0 %v1626_v5  ;;  %1756 = vmatpush.msra.mxu2 %v1593_v41  ;;  %v1837_v5 = vld [vmem:[#allocation8 + $0x298] sm:$0xff] }
 0x554   : > { %vm1320_vm12 = vcmp.gt.f32.partialorder %v1262_v63, 0.0  ;;  %v1336_v10 = vmul.f32 0.01, %v1262_v63  ;;  %vm1321_vm13 = vcmp.gt.f32.partialorder %v1303_v1, 0.0  ;;  %v1337_v33 = vmul.f32 0.01, %v1303_v1  ;;  %1797 = vmatpush.msrb.mxu3 %v1625_v26 }
 0x555   : > { %v1354_v23 = vsel %vm1322_vm14, %v1265_v44, %v1338_v34  ;;  %1715 = vmatpush.msrb.mxu0 %v1624_v43  ;;  %1757 = vmatpush.msra.mxu2 %v1591_v42  ;;  %v1836_v26 = vld [vmem:[#allocation8 + $0x268] sm:$0xff]  ;;  %v3288_v46 = vld [vmem:[#allocation8 + $0x538] sm:$0xff] }
 0x556   : > { %v1352_v12 = vsel %vm1320_vm12, %v1262_v63, %v1336_v10  ;;  %v1353_v2 = vsel %vm1321_vm13, %v1303_v1, %v1337_v33  ;;  %1798 = vmatpush.msrb.mxu3 %v1623_v45  ;;  %v1835_v45 = vld [vmem:[#allocation8 + $0x238] sm:$0xff] }
 0x557   : > { %1460 = vmatmul.f32.gmra.mxu1 %v1352_v12  ;;  %1501 = vmatmul.f32.gmra.mxu0 %v1353_v2 }
 0x558   : > { %1542 = vmatmul.f32.gmra.mxu2 %v1352_v12  ;;  %1583 = vmatmul.f32.gmra.mxu3 %v1353_v2 }
 0x559   : > { %v1305_v54 = vpop.f32.mrf.mxu3  ;;  %1716 = vmatpush.msrb.mxu0 %v1622_v32  ;;  %v3286_v32 = vld [vmem:[#allocation8 + $0x568] sm:$0xff] }
 0x55a   : > { %v1306_v22 = vadd.f32 %v1305_v54, %v3241_v37  ;;  %v1596_v37 = vld [vmem:[#allocation8 + $0xa0] sm:$0xff] }
 0x55b   : > { %1672 = vmatpush.msrb.mxu1 %v1596_v37  ;;  %v1838_v37 = vld [vmem:[#allocation8 + $0x2c8] sm:$0xff]  ;;  %1901 = vmatpush.msra.mxu0 %v3275_v62 }
 0x55c   : > { %vm1323_vm15 = vcmp.gt.f32.partialorder %v1306_v22, 0.0  ;;  %v1339_v13 = vmul.f32 0.01, %v1306_v22 }
 0x55d   : > { %1673 = vmatpush.msrb.mxu1 %v1594_v25  ;;  %1902 = vmatpush.msra.mxu0 %v3278_v39 }
 0x55e   : > { %v1355_v30 = vsel %vm1323_vm15, %v1306_v22, %v1339_v13 }
 0x55f   : > { %1463 = vmatmul.f32.gmra.mxu1 %v1354_v23  ;;  %1504 = vmatmul.f32.gmra.mxu0 %v1355_v30 }
 0x560   : > { %1545 = vmatmul.f32.gmra.mxu2 %v1354_v23  ;;  %1586 = vmatmul.f32.gmra.mxu3 %v1355_v30  ;;  %v1839_v30 = vld [vmem:[#allocation8 + $0x2f8] sm:$0xff] }
 0x561   : > { %1674 = vmatpush.msrb.mxu1 %v1592_v35  ;;  %1903 = vmatpush.msra.mxu0 %v3280_v27 }
 0x563   : > { %1675 = vmatpush.msrb.mxu1 %v1590_v40  ;;  %1904 = vmatpush.msra.mxu0 %v3286_v32 }
 0x565   : > { %1860 = vmatpush.msra.mxu1 %v1839_v30  ;;  %1905 = vmatpush.msra.mxu0 %v3288_v46  ;;  %v1844_v30 = vld [vmem:[#allocation8 + $0x3e8] sm:$0xff] }
 0x567   : > { %1861 = vmatpush.msra.mxu1 %v1838_v37  ;;  %v1842_v37 = vld [vmem:[#allocation8 + $0x388] sm:$0xff] }
 0x569   : > { %1862 = vmatpush.msra.mxu1 %v1837_v5 }
 0x56b   : > { %1863 = vmatpush.msra.mxu1 %v1836_v26 }
 0x56d   : > { %1864 = vmatpush.msra.mxu1 %v1835_v45 }
 0x5a4   : > { %v1443_v50 = vpop.f32.mrf.mxu1  ;;  %v1484_v51 = vpop.f32.mrf.mxu0 }
 0x5a5   : > { %v1444_v52 = vadd.f32 %v1443_v50, %v3262_v48 }
 0x5a7   : > { %v1485_v53 = vadd.f32 %v1484_v51, %v1444_v52  ;;  %v1834_v52 = vld [vmem:[#allocation8 + $0x208] sm:$0xff] }
 0x5a8   : > { %1865 = vmatpush.msra.mxu1 %v1834_v52 }
 0x5a9   : > { %1676 = vmatmul.f32.vlgmr.msrb.gmra.mxu1 %v1485_v53  ;;  %1758 = vmatmul.f32.vlgmr.msra.gmra.mxu2 %v1485_v53  ;;  %v3291_v53 = vld [vmem:[#allocation8 + $0x508] sm:$0xff] }
 0x5aa   : > { %1906 = vmatpush.msra.mxu0 %v3291_v53 }
 0x5ab   : > { %v1525_v58 = vpop.f32.mrf.mxu2  ;;  %v1566_v59 = vpop.f32.mrf.mxu3 }
 0x5ac   : > { %v1526_v61 = vadd.f32 %v1525_v58, %v3265_v55  ;;  %v1446_v49 = vpop.f32.mrf.mxu1  ;;  %v1487_v63 = vpop.f32.mrf.mxu0 }
 0x5ad   : > { %v1447_v1 = vadd.f32 %v1446_v49, %v3262_v48 }
 0x5ae   : > { %v1567_v3 = vadd.f32 %v1566_v59, %v1526_v61 }
 0x5af   : > { %v1488_v60 = vadd.f32 %v1487_v63, %v1447_v1 }
 0x5b0   : > { %1717 = vmatmul.f32.vlgmr.msrb.gmra.mxu0 %v1567_v3  ;;  %1799 = vmatmul.f32.vlgmr.msrb.gmra.mxu3 %v1567_v3  ;;  %v1833_v3 = vld [vmem:[#allocation8 + $0x1d8] sm:$0xff] }
 0x5b1   : > { %1679 = vmatmul.f32.gmra.mxu1 %v1488_v60  ;;  %1761 = vmatmul.f32.gmra.mxu2 %v1488_v60  ;;  %v3297_v60 = vld [vmem:[#allocation8 + $0x4d8] sm:$0xff] }
 0x5b2   : > { %1866 = vmatpush.msra.mxu1 %v1833_v3  ;;  %1907 = vmatpush.msra.mxu0 %v3297_v60 }
 0x5b3   : > { %v1528_v7 = vpop.f32.mrf.mxu2  ;;  %v1569_v9 = vpop.f32.mrf.mxu3 }
 0x5b4   : > { %v1529_v10 = vadd.f32 %v1528_v7, %v3265_v55  ;;  %v1449_v33 = vpop.f32.mrf.mxu1  ;;  %v1490_v44 = vpop.f32.mrf.mxu0  ;;  %v1832_v7 = vld [vmem:[#allocation8 + $0x1a8] sm:$0xff] }
 0x5b5   : > { %v1450_v12 = vadd.f32 %v1449_v33, %v3262_v48  ;;  %1867 = vmatpush.msra.mxu1 %v1832_v7 }
 0x5b6   : > { %v1570_v2 = vadd.f32 %v1569_v9, %v1529_v10  ;;  %v1848_v9 = vld [vmem:[#allocation8 + $0x4a8] sm:$0xff] }
 0x5b7   : > { %v1491_v19 = vadd.f32 %v1490_v44, %v1450_v12  ;;  %v1831_v44 = vld [vmem:[#allocation8 + $0x178] sm:$0xff]  ;;  %1908 = vmatpush.msra.mxu0 %v1848_v9 }
 0x5b8   : > { %1720 = vmatmul.f32.gmra.mxu0 %v1570_v2  ;;  %1802 = vmatmul.f32.gmra.mxu3 %v1570_v2  ;;  %v1847_v12 = vld [vmem:[#allocation8 + $0x478] sm:$0xff] }
 0x5b9   : > { %1682 = vmatmul.f32.gmra.mxu1 %v1491_v19  ;;  %1764 = vmatmul.f32.gmra.mxu2 %v1491_v19 }
 0x5ba   : > { %1868 = vmatpush.msra.mxu1 %v1831_v44  ;;  %1909 = vmatpush.msra.mxu0 %v1847_v12 }
 0x5bb   : > { %v1531_v14 = vpop.f32.mrf.mxu2  ;;  %v1572_v31 = vpop.f32.mrf.mxu3 }
 0x5bc   : > { %v1532_v20 = vadd.f32 %v1531_v14, %v3265_v55  ;;  %v1452_v0 = vpop.f32.mrf.mxu1  ;;  %v1493_v11 = vpop.f32.mrf.mxu0 }
 0x5bd   : > { %v1453_v54 = vadd.f32 %v1452_v0, %v3262_v48 }
 0x5be   : > { %v1573_v15 = vadd.f32 %v1572_v31, %v1532_v20 }
 0x5bf   : > { %v1494_v21 = vadd.f32 %v1493_v11, %v1453_v54  ;;  %v1830_v11 = vld [vmem:[#allocation8 + $0x148] sm:$0xff] }
 0x5c0   : > { %1723 = vmatmul.f32.gmra.mxu0 %v1573_v15  ;;  %1805 = vmatmul.f32.gmra.mxu3 %v1573_v15  ;;  %v1846_v54 = vld [vmem:[#allocation8 + $0x448] sm:$0xff]  ;;  %v1829_v15 = vld [vmem:[#allocation8 + $0x118] sm:$0xff] }
 0x5c1   : > { %1685 = vmatmul.f32.gmra.mxu1 %v1494_v21  ;;  %1767 = vmatmul.f32.gmra.mxu2 %v1494_v21 }
 0x5c2   : > { %1869 = vmatpush.msra.mxu1 %v1830_v11  ;;  %1910 = vmatpush.msra.mxu0 %v1846_v54 }
 0x5c3   : > { %v1534_v22 = vpop.f32.mrf.mxu2  ;;  %v1575_v34 = vpop.f32.mrf.mxu3 }
 0x5c4   : > { %v1535_v8 = vadd.f32 %v1534_v22, %v3265_v55  ;;  %v1455_v16 = vpop.f32.mrf.mxu1  ;;  %v1496_v17 = vpop.f32.mrf.mxu0  ;;  %v1828_v22 = vld [vmem:[#allocation8 + $0xe8] sm:$0xff]  ;;  %1870 = vmatpush.msra.mxu1 %v1829_v15 }
 0x5c5   : > { %v1456_v56 = vadd.f32 %v1455_v16, %v3262_v48  ;;  %v1827_v16 = vld [vmem:[#allocation8 + $0xb8] sm:$0xff] }
 0x5c6   : > { %v1576_v13 = vadd.f32 %v1575_v34, %v1535_v8  ;;  %1871 = vmatpush.msra.mxu1 %v1828_v22 }
 0x5c7   : > { %v1497_v23 = vadd.f32 %v1496_v17, %v1456_v56  ;;  %v1826_v17 = vld [vmem:[#allocation8 + $0x88] sm:$0xff]  ;;  %v1825_v56 = vld [vmem:[#allocation8 + $0x58] sm:$0xff] }
 0x5c8   : > { %1726 = vmatmul.f32.gmra.mxu0 %v1576_v13  ;;  %1808 = vmatmul.f32.gmra.mxu3 %v1576_v13  ;;  %v1845_v13 = vld [vmem:[#allocation8 + $0x418] sm:$0xff] }
 0x5c9   : > { %1688 = vmatmul.f32.gmra.mxu1 %v1497_v23  ;;  %1770 = vmatmul.f32.gmra.mxu2 %v1497_v23  ;;  %v1824_v23 = vld [vmem:[#allocation8 + $0x28] sm:$0xff] }
 0x5ca   : > { %1872 = vmatpush.msra.mxu1 %v1827_v16  ;;  %1911 = vmatpush.msra.mxu0 %v1845_v13 }
 0x5cb   : > { %v1537_v24 = vpop.f32.mrf.mxu2  ;;  %v1578_v25 = vpop.f32.mrf.mxu3 }
 0x5cc   : > { %v1538_v35 = vadd.f32 %v1537_v24, %v3265_v55  ;;  %v1458_v36 = vpop.f32.mrf.mxu1  ;;  %v1499_v41 = vpop.f32.mrf.mxu0  ;;  %1873 = vmatpush.msra.mxu1 %v1826_v17  ;;  %1912 = vmatpush.msra.mxu0 %v1844_v30  ;;  %v1841_v24 = vld [vmem:[#allocation8 + $0x358] sm:$0xff] }
 0x5cd   : > { %v1459_v43 = vadd.f32 %v1458_v36, %v3262_v48 }
 0x5ce   : > { %v1579_v40 = vadd.f32 %v1578_v25, %v1538_v35  ;;  %1874 = vmatpush.msra.mxu1 %v1825_v56  ;;  %v1840_v25 = vld [vmem:[#allocation8 + $0x328] sm:$0xff] }
 0x5cf   : > { %v1500_v42 = vadd.f32 %v1499_v41, %v1459_v43 }
 0x5d0   : > { %1729 = vmatmul.f32.gmra.mxu0 %v1579_v40  ;;  %1811 = vmatmul.f32.gmra.mxu3 %v1579_v40 }
 0x5d1   : > { %1691 = vmatmul.f32.gmra.mxu1 %v1500_v42  ;;  %1773 = vmatmul.f32.gmra.mxu2 %v1500_v42 }
 0x5d2   : > { %1875 = vmatpush.msra.mxu1 %v1824_v23 }
 0x5d3   : > { %v1540_v50 = vpop.f32.mrf.mxu2  ;;  %v1581_v51 = vpop.f32.mrf.mxu3 }
 0x5d4   : > { %v1541_v58 = vadd.f32 %v1540_v50, %v3265_v55  ;;  %v1461_v59 = vpop.f32.mrf.mxu1  ;;  %v1502_v61 = vpop.f32.mrf.mxu0  ;;  %2238 = vmatpush.msrb.mxu1 %v3275_v62  ;;  %v1654_v62 = vld [vmem:[#allocation11 + $0x6] sm:$0x3] }
 0x5d5   : > { %v1462_v49 = vadd.f32 %v1461_v59, %v3262_v48  ;;  %v3310_v5 = vperm.slane %v1654_v62, 0  ;;  %v3313_v43 = vperm.slane %v1654_v62, 1 }
 0x5d6   : > { %v1582_v63 = vadd.f32 %v1581_v51, %v1541_v58  ;;  %2239 = vmatpush.msrb.mxu1 %v3278_v39 }
 0x5d7   : > { %v1503_v1 = vadd.f32 %v1502_v61, %v1462_v49 }
 0x5d8   : > { %1732 = vmatmul.f32.gmra.mxu0 %v1582_v63  ;;  %1814 = vmatmul.f32.gmra.mxu3 %v1582_v63 }
 0x5d9   : > { %1694 = vmatmul.f32.gmra.mxu1 %v1503_v1  ;;  %1776 = vmatmul.f32.gmra.mxu2 %v1503_v1 }
 0x5da   : > { %2240 = vmatpush.msrb.mxu1 %v3280_v27 }
 0x5db   : > { %v1543_v10 = vpop.f32.mrf.mxu2  ;;  %v1584_v33 = vpop.f32.mrf.mxu3 }
 0x5dc   : > { %v1544_v2 = vadd.f32 %v1543_v10, %v3265_v55  ;;  %v1464_v19 = vpop.f32.mrf.mxu1  ;;  %v1505_v20 = vpop.f32.mrf.mxu0  ;;  %2241 = vmatpush.msrb.mxu1 %v3286_v32 }
 0x5dd   : > { %v1465_v14 = vadd.f32 %v1464_v19, %v3262_v48 }
 0x5de   : > { %v1585_v31 = vadd.f32 %v1584_v33, %v1544_v2  ;;  %2242 = vmatpush.msrb.mxu1 %v3288_v46 }
 0x5df   : > { %v1506_v0 = vadd.f32 %v1505_v20, %v1465_v14 }
 0x5e0   : > { %1735 = vmatmul.f32.gmra.mxu0 %v1585_v31  ;;  %1817 = vmatmul.f32.gmra.mxu3 %v1585_v31 }
 0x5e1   : > { %1697 = vmatmul.f32.gmra.mxu1 %v1506_v0  ;;  %1779 = vmatmul.f32.gmra.mxu2 %v1506_v0 }
 0x5e2   : > { %2243 = vmatpush.msrb.mxu1 %v3291_v53 }
 0x5e3   : > { %v1546_v21 = vpop.f32.mrf.mxu2  ;;  %v1587_v48 = vpop.f32.mrf.mxu3 }
 0x5e4   : > { %v1547_v34 = vadd.f32 %v1546_v21, %v3265_v55  ;;  %v1843_v55 = vld [vmem:[#allocation8 + $0x3b8] sm:$0xff]  ;;  %2244 = vmatpush.msrb.mxu1 %v3297_v60 }
 0x5e5   : > { %1913 = vmatpush.msra.mxu0 %v1843_v55 }
 0x5e6   : > { %v1588_v8 = vadd.f32 %v1587_v48, %v1547_v34  ;;  %2245 = vmatpush.msrb.mxu1 %v1848_v9 }
 0x5e7   : > { %1914 = vmatpush.msra.mxu0 %v1842_v37 }
 0x5e8   : > { %1738 = vmatmul.f32.gmra.mxu0 %v1588_v8  ;;  %1820 = vmatmul.f32.gmra.mxu3 %v1588_v8 }
 0x5e9   : > { %1915 = vmatpush.msra.mxu0 %v1841_v24  ;;  %2246 = vmatpush.msrb.mxu1 %v1847_v12 }
 0x5eb   : > { %1916 = vmatpush.msra.mxu0 %v1840_v25  ;;  %2247 = vmatpush.msrb.mxu1 %v1846_v54 }
 0x5ed   : > { %2248 = vmatpush.msrb.mxu1 %v1845_v13 }
 0x5ef   : > { %2249 = vmatpush.msrb.mxu1 %v1844_v30 }
 0x5f1   : > { %2250 = vmatpush.msrb.mxu1 %v1843_v55 }
 0x5f3   : > { %2251 = vmatpush.msrb.mxu1 %v1842_v37 }
 0x5f5   : > { %2252 = vmatpush.msrb.mxu1 %v1841_v24 }
 0x5f7   : > { %2253 = vmatpush.msrb.mxu1 %v1840_v25 }
 0x626   : > { %v1677_v39 = vpop.f32.mrf.mxu1 }
 0x627   : > { %v1678_v27 = vadd.f32 %v1677_v39, %v3310_v5 }
 0x62c   : > { %v1759_v35 = vpop.f32.mrf.mxu2 }
 0x62d   : > { %v1718_v36 = vpop.f32.mrf.mxu0  ;;  %v1760_v42 = vadd.f32 %v1759_v35, %v3313_v43 }
 0x62e   : > { %v1719_v41 = vadd.f32 %v1718_v36, %v1678_v27  ;;  %v1680_v40 = vpop.f32.mrf.mxu1 }
 0x62f   : > { %v1681_v32 = vadd.f32 %v1680_v40, %v3310_v5 }
 0x630   : > { %1876 = vmatmul.f32.vlgmr.msra.gmra.mxu1 %v1719_v41 }
 0x633   : > { %v1800_v26 = vpop.f32.mrf.mxu3 }
 0x634   : > { %v1801_v45 = vadd.f32 %v1800_v26, %v1760_v42  ;;  %v1762_v46 = vpop.f32.mrf.mxu2 }
 0x635   : > { %v1721_v50 = vpop.f32.mrf.mxu0  ;;  %v1763_v53 = vadd.f32 %v1762_v46, %v3313_v43 }
 0x636   : > { %v1722_v51 = vadd.f32 %v1721_v50, %v1681_v32  ;;  %1917 = vmatmul.f32.vlgmr.msra.gmra.mxu0 %v1801_v45  ;;  %v1683_v52 = vpop.f32.mrf.mxu1  ;;  %v2365_v50 = vld [vmem:[#allocation11 + $0x8] ss:$0 sm:$0xff] }
 0x637   : > { %v1684_v59 = vadd.f32 %v1683_v52, %v3310_v5 }
 0x638   : > { %1879 = vmatmul.f32.gmra.mxu1 %v1722_v51 }
 0x63b   : > { %v1803_v58 = vpop.f32.mrf.mxu3 }
 0x63c   : > { %v1804_v61 = vadd.f32 %v1803_v58, %v1763_v53  ;;  %v1765_v49 = vpop.f32.mrf.mxu2 }
 0x63d   : > { %v1724_v63 = vpop.f32.mrf.mxu0  ;;  %v1766_v60 = vadd.f32 %v1765_v49, %v3313_v43 }
 0x63e   : > { %v1725_v1 = vadd.f32 %v1724_v63, %v1684_v59  ;;  %1920 = vmatmul.f32.gmra.mxu0 %v1804_v61  ;;  %v1686_v3 = vpop.f32.mrf.mxu1 }
 0x63f   : > { %v1687_v9 = vadd.f32 %v1686_v3, %v3310_v5 }
 0x640   : > { %1882 = vmatmul.f32.gmra.mxu1 %v1725_v1 }
 0x643   : > { %v1806_v7 = vpop.f32.mrf.mxu3 }
 0x644   : > { %v1807_v10 = vadd.f32 %v1806_v7, %v1766_v60  ;;  %v1768_v33 = vpop.f32.mrf.mxu2 }
 0x645   : > { %v1727_v44 = vpop.f32.mrf.mxu0  ;;  %v1769_v19 = vadd.f32 %v1768_v33, %v3313_v43 }
 0x646   : > { %v1728_v12 = vadd.f32 %v1727_v44, %v1687_v9  ;;  %1923 = vmatmul.f32.gmra.mxu0 %v1807_v10  ;;  %v1689_v2 = vpop.f32.mrf.mxu1 }
 0x647   : > { %v1690_v31 = vadd.f32 %v1689_v2, %v3310_v5 }
 0x648   : > { %1885 = vmatmul.f32.gmra.mxu1 %v1728_v12 }
 0x64b   : > { %v1809_v14 = vpop.f32.mrf.mxu3 }
 0x64c   : > { %v1810_v20 = vadd.f32 %v1809_v14, %v1769_v19  ;;  %v1771_v0 = vpop.f32.mrf.mxu2 }
 0x64d   : > { %v1730_v11 = vpop.f32.mrf.mxu0  ;;  %v1772_v21 = vadd.f32 %v1771_v0, %v3313_v43  ;;  %v2691_v0 = vmov 0.0  }
 0x64e   : > { %v1731_v54 = vadd.f32 %v1730_v11, %v1690_v31  ;;  %1926 = vmatmul.f32.gmra.mxu0 %v1810_v20  ;;  %v1692_v15 = vpop.f32.mrf.mxu1  ;;  %2000 = vst [vmem:[%s3342_s20 + $0x10] sm:$0xff] %v2691_v0 }
 0x64f   : > { %v1693_v34 = vadd.f32 %v1692_v15, %v3310_v5  ;;  %1998 = vst [vmem:[%s3342_s20] sm:$0xff] %v2691_v0 }
 0x650   : > { %1888 = vmatmul.f32.gmra.mxu1 %v1731_v54  ;;  %1999 = vst [vmem:[%s3342_s20 + $0x8] sm:$0xff] %v2691_v0 }
 0x651   : > { %2001 = vst [vmem:[%s3342_s20 + $0x18] sm:$0xff] %v2691_v0 }
 0x652   : > { %2002 = vst [vmem:[%s3342_s20 + $0x20] sm:$0xff] %v2691_v0 }
 0x653   : > { %v1812_v22 = vpop.f32.mrf.mxu3  ;;  %2003 = vst [vmem:[%s3342_s20 + $0x28] sm:$0xff] %v2691_v0 }
 0x654   : > { %v1813_v48 = vadd.f32 %v1812_v22, %v1772_v21  ;;  %v1774_v16 = vpop.f32.mrf.mxu2  ;;  %2004 = vst [vmem:[%s3342_s20 + $0x30] sm:$0xff] %v2691_v0 }
 0x655   : > { %v1733_v8 = vpop.f32.mrf.mxu0  ;;  %v1775_v13 = vadd.f32 %v1774_v16, %v3313_v43  ;;  %2005 = vst [vmem:[%s3342_s20 + $0x38] sm:$0xff] %v2691_v0 }
 0x656   : > { %v1734_v17 = vadd.f32 %v1733_v8, %v1693_v34  ;;  %1929 = vmatmul.f32.gmra.mxu0 %v1813_v48  ;;  %v1695_v56 = vpop.f32.mrf.mxu1 }
 0x657   : > { %v1696_v30 = vadd.f32 %v1695_v56, %v3310_v5 }
 0x658   : > { %1891 = vmatmul.f32.gmra.mxu1 %v1734_v17 }
 0x65b   : > { %v1815_v23 = vpop.f32.mrf.mxu3 }
 0x65c   : > { %v1816_v55 = vadd.f32 %v1815_v23, %v1775_v13  ;;  %v1777_v25 = vpop.f32.mrf.mxu2 }
 0x65d   : > { %v1736_v37 = vpop.f32.mrf.mxu0  ;;  %v1778_v39 = vadd.f32 %v1777_v25, %v3313_v43 }
 0x65e   : > { %v1737_v24 = vadd.f32 %v1736_v37, %v1696_v30  ;;  %1932 = vmatmul.f32.gmra.mxu0 %v1816_v55  ;;  %v1698_v62 = vpop.f32.mrf.mxu1 }
 0x65f   : > { %v1699_v35 = vadd.f32 %v1698_v62, %v3310_v5 }
 0x660   : > { %1894 = vmatmul.f32.gmra.mxu1 %v1737_v24 }
 0x663   : > { %v1818_v27 = vpop.f32.mrf.mxu3 }
 0x664   : > { %v1819_v36 = vadd.f32 %v1818_v27, %v1778_v39  ;;  %v1780_v42 = vpop.f32.mrf.mxu2 }
 0x665   : > { %v1739_v41 = vpop.f32.mrf.mxu0  ;;  %v1781_v32 = vadd.f32 %v1780_v42, %v3313_v43 }
 0x666   : > { %v1740_v40 = vadd.f32 %v1739_v41, %v1699_v35  ;;  %1935 = vmatmul.f32.gmra.mxu0 %v1819_v36 }
 0x668   : > { %1897 = vmatmul.f32.gmra.mxu1 %v1740_v40 }
 0x66b   : > { %v1821_v26 = vpop.f32.mrf.mxu3 }
 0x66c   : > { %v1822_v45 = vadd.f32 %v1821_v26, %v1781_v32 }
 0x670   : > { %1938 = vmatmul.f32.vlgmr.msrb.gmra.mxu1 %v1822_v45 }
 0x6ad   : > { %v1877_v46 = vpop.f32.mrf.mxu1 }
 0x6ae   : > { %v1878_v51 = vadd.f32 %v2365_v50, %v1877_v46 }
 0x6b3   : > { %v1918_v52 = vpop.f32.mrf.mxu0 }
 0x6b4   : > { %v1919_v53 = vadd.f32 %v1918_v52, %v1878_v51 }
 0x6b5   : > { %v1880_v58 = vpop.f32.mrf.mxu1 }
 0x6b6   : > { %2392 = vtanh.f32 %v1919_v53  ;;  %v1881_v59 = vadd.f32 %v2365_v50, %v1880_v58 }
 0x6bb   : > { %v1921_v5 = vpop.f32.mrf.mxu0 }
 0x6bc   : > { %v3330_v61 = vpop.eup %2392  ;;  %v1922_v49 = vadd.f32 %v1921_v5, %v1881_v59 }
 0x6bd   : > { %v1883_v63 = vpop.f32.mrf.mxu1  ;;  %1958 = vrot.lane.b32.xlu0 %v3330_v61, %s2690_s16 }
 0x6be   : > { %2394 = vtanh.f32 %v1922_v49  ;;  %v1884_v43 = vadd.f32 %v2365_v50, %v1883_v63 }
 0x6c3   : > { %v1924_v1 = vpop.f32.mrf.mxu0 }
 0x6c4   : > { %v3334_v3 = vpop.eup %2394  ;;  %v1925_v60 = vadd.f32 %v1924_v1, %v1884_v43 }
 0x6c5   : > { %v1886_v7 = vpop.f32.mrf.mxu1  ;;  %1960 = vrot.lane.b32.xlu1 %v3334_v3, %s2690_s16 }
 0x6c6   : > { %2396 = vtanh.f32 %v1925_v60  ;;  %v1887_v9 = vadd.f32 %v2365_v50, %v1886_v7 }
 0x6cb   : > { %v1927_v10 = vpop.f32.mrf.mxu0 }
 0x6cc   : > { %v2397_v33 = vpop.eup %2396  ;;  %v1928_v44 = vadd.f32 %v1927_v10, %v1887_v9 }
 0x6cd   : > { %v1889_v12 = vpop.f32.mrf.mxu1  ;;  %1962 = vrot.lane.b32.xlu2 %v2397_v33, %s2690_s16 }
 0x6ce   : > { %2398 = vtanh.f32 %v1928_v44  ;;  %v1890_v2 = vadd.f32 %v2365_v50, %v1889_v12 }
 0x6d3   : > { %v1930_v19 = vpop.f32.mrf.mxu0 }
 0x6d4   : > { %v2399_v14 = vpop.eup %2398  ;;  %v1931_v31 = vadd.f32 %v1930_v19, %v1890_v2 }
 0x6d5   : > { %1964 = vrot.lane.b32.xlu0 %v2399_v14, %s2690_s16  ;;  %v1892_v20 = vpop.f32.mrf.mxu1 }
 0x6d6   : > { %2400 = vtanh.f32 %v1931_v31  ;;  %v1893_v11 = vadd.f32 %v2365_v50, %v1892_v20 }
 0x6db   : > { %v1933_v54 = vpop.f32.mrf.mxu0 }
 0x6dc   : > { %v2401_v15 = vpop.eup %2400  ;;  %v1934_v21 = vadd.f32 %v1933_v54, %v1893_v11 }
 0x6dd   : > { %1966 = vrot.lane.b32.xlu1 %v2401_v15, %s2690_s16  ;;  %v1895_v22 = vpop.f32.mrf.mxu1 }
 0x6de   : > { %2402 = vtanh.f32 %v1934_v21  ;;  %v1896_v34 = vadd.f32 %v2365_v50, %v1895_v22 }
 0x6e3   : > { %v1936_v48 = vpop.f32.mrf.mxu0 }
 0x6e4   : > { %v2403_v8 = vpop.eup %2402  ;;  %v1937_v16 = vadd.f32 %v1936_v48, %v1896_v34 }
 0x6e5   : > { %v1898_v17 = vpop.f32.mrf.mxu1  ;;  %1968 = vrot.lane.b32.xlu2 %v2403_v8, %s2690_s16 }
 0x6e6   : > { %2404 = vtanh.f32 %v1937_v16  ;;  %v1899_v13 = vadd.f32 %v2365_v50, %v1898_v17 }
 0x6ec   : > { %v2405_v56 = vpop.eup %2404 }
 0x6ed   : > { %v1939_v23 = vpop.f32.mrf.mxu1  ;;  %1970 = vrot.lane.b32.xlu0 %v2405_v56, %s2690_s16 }
 0x6ee   : > { %v1940_v30 = vadd.f32 %v1939_v23, %v1899_v13 }
 0x6f0   : > { %2406 = vtanh.f32 %v1940_v30 }
 0x6f6   : > { %v2407_v55 = vpop.eup %2406 }
 0x6f7   : > { %1972 = vrot.lane.b32.xlu1 %v2407_v55, %s2690_s16 }
 0x727   : > { %v1963_v37 = vpop.permute.xlu2 %1962 }
 0x728   : > { %v1984_v24 = vadd.f32 %v2397_v33, %v1963_v37 }
 0x72a   : > { %v1992_v25 = vmul.f32 0.5, %v1984_v24 }
 0x72c   : > { %2009 = vst.msk [vmem:[%s3342_s20 + $0x10] sm:$0xff] %vm2006_vm0, %v1992_v25 }
 0x72d   : > { %2018 = vst.msk [vmem:[%s3342_s20 + $0x10] sm:$0xff] %vm2015_vm1, %v3180_v29 }
 0x72f   : > { %v1959_v62 = vpop.permute.xlu0 %1958 }
 0x730   : > { %v1982_v39 = vadd.f32 %v3330_v61, %v1959_v62 }
 0x732   : > { %v1990_v27 = vmul.f32 0.5, %v1982_v39 }
 0x734   : > { %2007 = vst.msk [vmem:[%s3342_s20] sm:$0xff] %vm2006_vm0, %v1990_v27 }
 0x735   : > { %2016 = vst.msk [vmem:[%s3342_s20] sm:$0xff] %vm2015_vm1, %v3176_v18 }
 0x737   : > { %v1961_v35 = vpop.permute.xlu1 %1960 }
 0x738   : > { %v1983_v36 = vadd.f32 %v3334_v3, %v1961_v35 }
 0x73a   : > { %v1991_v41 = vmul.f32 0.5, %v1983_v36 }
 0x73c   : > { %2008 = vst.msk [vmem:[%s3342_s20 + $0x8] sm:$0xff] %vm2006_vm0, %v1991_v41 }
 0x73d   : > { %2017 = vst.msk [vmem:[%s3342_s20 + $0x8] sm:$0xff] %vm2015_vm1, %v3178_v28 }
 0x73f   : > { %v1969_v29 = vpop.permute.xlu2 %1968 }
 0x740   : > { %v1987_v40 = vadd.f32 %v2403_v8, %v1969_v29 }
 0x742   : > { %v1995_v42 = vmul.f32 0.5, %v1987_v40 }
 0x744   : > { %2012 = vst.msk [vmem:[%s3342_s20 + $0x28] sm:$0xff] %vm2006_vm0, %v1995_v42 }
 0x745   : > { %2021 = vst.msk [vmem:[%s3342_s20 + $0x28] sm:$0xff] %vm2015_vm1, %v3197_v47 }
 0x747   : > { %v1965_v18 = vpop.permute.xlu0 %1964 }
 0x748   : > { %v1985_v26 = vadd.f32 %v2399_v14, %v1965_v18 }
 0x74a   : > { %v1993_v32 = vmul.f32 0.5, %v1985_v26 }
 0x74c   : > { %2010 = vst.msk [vmem:[%s3342_s20 + $0x18] sm:$0xff] %vm2006_vm0, %v1993_v32 }
 0x74d   : > { %2019 = vst.msk [vmem:[%s3342_s20 + $0x18] sm:$0xff] %vm2015_vm1, %v3202_v57 }
 0x74f   : > { %v1967_v28 = vpop.permute.xlu1 %1966 }
 0x750   : > { %v1986_v45 = vadd.f32 %v2401_v15, %v1967_v28 }
 0x752   : > { %v1994_v46 = vmul.f32 0.5, %v1986_v45 }
 0x754   : > { %2011 = vst.msk [vmem:[%s3342_s20 + $0x20] sm:$0xff] %vm2006_vm0, %v1994_v46 }
 0x755   : > { %2020 = vst.msk [vmem:[%s3342_s20 + $0x20] sm:$0xff] %vm2015_vm1, %v3187_v38 }
 0x75f   : > { %v1971_v47 = vpop.permute.xlu0 %1970 }
 0x760   : > { %v1988_v50 = vadd.f32 %v2405_v56, %v1971_v47 }
 0x762   : > { %v1996_v51 = vmul.f32 0.5, %v1988_v50 }
 0x764   : > { %2013 = vst.msk [vmem:[%s3342_s20 + $0x30] sm:$0xff] %vm2006_vm0, %v1996_v51 }
 0x765   : > { %2022 = vst.msk [vmem:[%s3342_s20 + $0x30] sm:$0xff] %vm2015_vm1, %v3212_v4 }
 0x769   : > { %v1973_v57 = vpop.permute.xlu1 %1972 }
 0x76a   : > { %v1989_v52 = vadd.f32 %v2407_v55, %v1973_v57 }
 0x76c   : > { %v1997_v38 = vmul.f32 0.5, %v1989_v52 }
 0x76e   : > { %2014 = vst.msk [vmem:[%s3342_s20 + $0x38] sm:$0xff] %vm2006_vm0, %v1997_v38 }
 0x76f   : > { %2023 = vst.msk [vmem:[%s3342_s20 + $0x38] sm:$0xff] %vm2015_vm1, %v3183_v6 }
 0x770   : > { %2623 = shalt.err (!%p2620_p8)
}
 0x771   : > { %s2692_s12 = smov 128  }
 0x772   : > { %2276 = dma.vmem_to_hbm [thread:$0]  (%p2816_p12), %s2038_s15, 1024, %s2040_s8, %s2025_s28, %s2692_s12, %s2692_s12, %s2689_s11  }
 0x773 PF: > { %p2313_p9 = scmp.ge.s32.totalorder %s2674_s24, 2  ;;  %s2054_s20 = sand.u32 1, %s2662_s21  }
 0x774   : > { %s2055_s25 = scalar_lea.sflag [#allocation4], %s2054_s20 }
 0x775   : > { %p2299_p10 = pnand %p2313_p9, %p2821_p2 }
 0x777   : > { %p2300_p13 = pneg %p2299_p10 }
 0x779   : > { %2657 = dma.done.wait (%p2300_p13), %s2055_s25, 1024  }
 0x77a   : > { %2659 = vsyncadd (%p2300_p13), %s2055_s25, 4294966272  ;;  %p22_p0 = scmp.ge.s32.totalorder %s2796_s19, 6   ;;  %s3449_s21 = smov %s2666_s22 }
 0x77b   : > { %s3450_s22 = smov %s2670_s23  ;;  %s3451_s23 = smov %s2808_s26 }
 0x77c   : > { %s3452_s24 = smov %s2796_s19  ;;  %24 = sbr.rel (!%p22_p0) target bundleno = 8 (0x8), region = 109 }
 0x781   :  { %2061 = vsyncpa [#allocation3], 1 }
 0x782   :  { %2063 = vsyncpa [#allocation3 + $0x1], 1 }
 0x783   :  { %2064 = vsyncpa [#allocation6], 1 }
 0x784   :  { %2065 = vsyncpa [#allocation9], 1 }
 0x785   :  { %2066 = vsyncpa [#allocation12], 1 }
 0x786   :  { %2067 = vsyncpa [#allocation4], 1 }
 0x787   :  { %2069 = vsyncpa [#allocation4 + $0x1], 1 }

</bundles_post_ra>
